<compile_context>
chip_gen: v7x
topology: tpu7x:2x2x1
jax: 0.10.0
libtpu: 0.0.40
codegen_flags: <defaults>
</compile_context>

<pallas_src>
import functools
import math

import jax
import jax.numpy as jnp
from jax import lax
from jax.experimental import pallas as pl
from jax.experimental.pallas import tpu as pltpu


_CODE_DTYPE = jnp.int8  # pool argmax codes are 0..3 -> int8 is lossless, 4x less HBM


# ----------------------------------------------------------------------------
# Compiler params (shared)
# ----------------------------------------------------------------------------
@functools.lru_cache(maxsize=None)
def _vmem_limit_bytes():
    """Generation-aware VMEM budget: ~3/4 of per-core VMEM, capped at 96 MiB.

    v7x has 64 MiB/TC (-> ~48 MiB budget); v5e/v6e have 128 MiB (-> 96 MiB).
    """
    try:
        cap = int(pltpu.get_tpu_info().vmem_capacity_bytes)
    except Exception:
        cap = 64 * 1024 * 1024  # conservative fallback (v7x-sized)
    return min(cap * 3 // 4, 96 * 1024 * 1024)


def _compiler_params():
    # Batch-tile grid is embarrassingly parallel -> shards across v7x's 2 TCs.
    return pltpu.CompilerParams(
        dimension_semantics=("parallel",),
        vmem_limit_bytes=_vmem_limit_bytes(),
    )


def _pick_btile(n, hw):
    """Batch-tile size folded into the matmul / store lane dimension.

    Prefers lane-dense blocks (width a multiple of 128, ideally >=512 lanes to
    amortize the ~0.35us/step grid overhead) while keeping grid length >= 2 so
    both v7x TensorCores get work; falls back to the whole batch (block ==
    full array, which is always a legal BlockSpec).
    """
    divs = [b for b in range(1, n + 1) if n % b == 0]
    for min_lanes in (512, 128):
        for b in divs:
            if b * hw >= min_lanes and (b * hw) % 128 == 0 and n // b >= 2:
                return b
    for b in divs:
        if (b * hw) % 128 == 0:
            return b
    return n


# ----------------------------------------------------------------------------
# Pallas kernels
# ----------------------------------------------------------------------------
def _conv_kernel(*refs, B, H, W, K, pad, use_bn, act, pre_bn, unpool):
    """Fused [BN-apply+ReLU] -> [MaxUnpool2d(2,2)] -> Conv2d -> [BN stats | bias+act].

    Ref order (static-flag dependent):
      inputs : x, [code], [pscale, pshift], w, [bias]
      outputs: out, [stats]
      scratch: xp
    Shapes (per grid step, B = batch tile):
      x      : (Cin, B*h*w) bf16     (h,w) = (H/2,W/2) if unpool else (H,W)
      code   : (Cin, B*h*w) int8     pool argmax codes (unpool only)
      pscale/pshift : (Cin, 1) f32   previous layer's BN scale/shift (pre_bn only)
      w      : (Cout, K*K*Cin) bf16  rows ordered (kh*K + kw)*Cin + cin
      bias   : (Cout, 1) f32         (only when use_bn=False)
      out    : (Cout, B*H*W) bf16 pre-BN (use_bn) or f32 activated (final conv)
      stats  : (1, 2, Cout) f32      [sum, sum_sq] over this block's lanes
      xp     : (Cin, B, H+2p, W+2p) bf16 zero-padded input scratch
    """
    it = iter(refs)
    x_ref = next(it)
    code_ref = next(it) if unpool else None
    pscale_ref = next(it) if pre_bn else None
    pshift_ref = next(it) if pre_bn else None
    w_ref = next(it)
    bias_ref = None if use_bn else next(it)
    out_ref = next(it)
    stat_ref = next(it) if use_bn else None
    xp_ref = next(it)

    cin = x_ref.shape[0]
    h, w = (H // 2, W // 2) if unpool else (H, W)
    Wp = W + 2 * pad

    # --- fused prologue: previous layer's BatchNorm + ReLU (f32 math) ---------
    xv = x_ref[...]
    if pre_bn:
        xv = jnp.maximum(
            xv.astype(jnp.float32) * pscale_ref[...] + pshift_ref[...], 0.0)
    xv = xv.astype(xp_ref.dtype)

    # --- optional fused MaxUnpool2d(2,2): scatter pooled values by code -------
    if unpool:
        x3 = xv.reshape(cin, B * h, w)
        code = code_ref[...].astype(jnp.int32).reshape(cin, B * h, w)
        zero = jnp.zeros_like(x3)
        rows = []
        for dh in range(2):
            cols2 = [jnp.where(code == (2 * dh + dw), x3, zero) for dw in range(2)]
            # interleave columns: (Cin, B*h, w, 2) -> (Cin, B*h, 2w)
            rows.append(jnp.stack(cols2, axis=-1).reshape(cin, B * h, 2 * w))
        # interleave rows: (Cin, B*h, 2, 2w) -> (Cin, B, H, W)
        x4 = jnp.stack(rows, axis=2).reshape(cin, B, H, W)
    else:
        x4 = xv.reshape(cin, B, H, W)

    # --- zero-padded copy into persistent VMEM scratch -------------------------
    # Only the halo is memset (the interior is fully overwritten every step);
    # done every step (not just program_id==0) so it stays correct when the
    # parallel grid is sharded across v7x's two TensorCores.
    xp_ref[:, :, :pad, :] = jnp.zeros((cin, B, pad, Wp), xp_ref.dtype)
    xp_ref[:, :, pad + H:, :] = jnp.zeros((cin, B, pad, Wp), xp_ref.dtype)
    xp_ref[:, :, pad:pad + H, :pad] = jnp.zeros((cin, B, H, pad), xp_ref.dtype)
    xp_ref[:, :, pad:pad + H, pad + W:] = jnp.zeros((cin, B, H, pad), xp_ref.dtype)
    xp_ref[:, :, pad:pad + H, pad:pad + W] = x4

    # --- im2col + ONE bf16 MXU matmul (contraction K*K*Cin, lanes B*H*W) ------
    L = B * H * W
    cols = [
        xp_ref[:, :, kh:kh + H, kw:kw + W].reshape(cin, L)
        for kh in range(K) for kw in range(K)
    ]
    col = jnp.concatenate(cols, axis=0)                        # (K*K*Cin, L) bf16
    acc = lax.dot_general(                                      # (Cout, L) f32
        w_ref[...], col, (((1,), (0,)), ((), ())),
        preferred_element_type=jnp.float32,
    )

    if use_bn:
        # Conv bias skipped: BatchNorm mean-subtraction cancels it exactly.
        out_ref[...] = acc.astype(out_ref.dtype)               # bf16 pre-BN
        # Lane-dense packed stats: (2, Cout) with Cout on lanes.
        stat_ref[0] = jnp.stack(
            [jnp.sum(acc, axis=1), jnp.sum(acc * acc, axis=1)], axis=0)
    else:
        acc = acc + bias_ref[...]
        if act == "sigmoid":
            acc = jax.nn.sigmoid(acc)
        elif act == "relu":
            acc = jnp.maximum(acc, 0.0)
        out_ref[...] = acc.astype(out_ref.dtype)


def _bn_relu_pool_kernel(x_ref, scale_ref, shift_ref, y_ref, code_ref, *, B, H, W):
    """Fused BatchNorm-apply + ReLU + MaxPool2d(2,2) with compact argmax codes.

    x_ref    : (C, B*H*W) bf16 pre-BN conv output
    y_ref    : (C, B*(H//2)*(W//2)) bf16 pooled maxima
    code_ref : (C, B*(H//2)*(W//2)) int8 argmax code (2*dh + dw), first-occurrence
               tie-break (consistent with the fused unpool in _conv_kernel).
    """
    C = x_ref.shape[0]
    h, w = H // 2, W // 2
    a = jnp.maximum(
        x_ref[...].astype(jnp.float32) * scale_ref[...] + shift_ref[...], 0.0)
    # Split even/odd columns then even/odd rows (batch folded into the row dim;
    # H is even so row parity == y parity).
    a4 = a.reshape(C, B * H, w, 2)
    ce = a4[:, :, :, 0].reshape(C, B * h, 2, w)
    co = a4[:, :, :, 1].reshape(C, B * h, 2, w)
    e00, e10 = ce[:, :, 0, :], ce[:, :, 1, :]
    e01, e11 = co[:, :, 0, :], co[:, :, 1, :]
    m01 = jnp.maximum(e00, e01)
    m23 = jnp.maximum(e10, e11)
    mx = jnp.maximum(m01, m23)
    c01 = jnp.where(e00 >= e01, 0, 1)
    c23 = jnp.where(e10 >= e11, 2, 3)
    code = jnp.where(m01 >= m23, c01, c23)
    y_ref[...] = mx.reshape(C, B * h * w).astype(y_ref.dtype)
    code_ref[...] = code.reshape(C, B * h * w).astype(code_ref.dtype)


# ----------------------------------------------------------------------------
# pallas_call wrappers
# ----------------------------------------------------------------------------
def conv_pass(x, p, *, N, H, W, use_bn, act="relu",
              pre_scale=None, pre_shift=None, code=None):
    """Fused [BN+ReLU prologue] -> [unpool 2x2] -> conv (-> BN stats | bias+act).

    x : (Cin, N*h*w) bf16 with (h,w) = (H/2, W/2) if `code` is given else (H,W).
    Returns (pre, stats) when use_bn else the activated output, all laid out as
    (Cout, N*H*W).
    """
    cin, L = x.shape
    K = p["k"]
    pad = K // 2
    cout = p["w"].shape[0]
    unpool = code is not None
    pre_bn = pre_scale is not None
    h, w = (H // 2, W // 2) if unpool else (H, W)
    assert L == N * h * w, "input size / spatial mismatch"
    assert p["w"].shape[1] == K * K * cin, "conv weight / input channel mismatch"
    if unpool:
        assert code.shape == (cin, N * h * w), "unpool indices / input mismatch"

    B = _pick_btile(N, h * w)
    G = N // B

    in_specs = [pl.BlockSpec((cin, B * h * w), lambda i: (0, i))]
    args = [x]
    if unpool:
        in_specs.append(pl.BlockSpec((cin, B * h * w), lambda i: (0, i)))
        args.append(code)
    if pre_bn:
        in_specs.append(pl.BlockSpec((cin, 1), lambda i: (0, 0)))
        in_specs.append(pl.BlockSpec((cin, 1), lambda i: (0, 0)))
        args.extend([pre_scale, pre_shift])
    in_specs.append(pl.BlockSpec(p["w"].shape, lambda i: (0, 0)))
    args.append(p["w"])
    if not use_bn:
        in_specs.append(pl.BlockSpec((cout, 1), lambda i: (0, 0)))
        args.append(p["b"])

    out_dtype = jnp.bfloat16 if use_bn else jnp.float32
    if use_bn:
        out_shape = (jax.ShapeDtypeStruct((cout, N * H * W), out_dtype),
                     jax.ShapeDtypeStruct((G, 2, cout), jnp.float32))
        out_specs = (pl.BlockSpec((cout, B * H * W), lambda i: (0, i)),
                     pl.BlockSpec((1, 2, cout), lambda i: (i, 0, 0)))
    else:
        out_shape = jax.ShapeDtypeStruct((cout, N * H * W), out_dtype)
        out_specs = pl.BlockSpec((cout, B * H * W), lambda i: (0, i))

    flops = 2 * cout * K * K * cin * N * H * W
    transc = (cout * N * H * W) if (not use_bn and act == "sigmoid") else 0
    bytes_acc = (x.size * x.dtype.itemsize
                 + (code.size if unpool else 0)
                 + p["w"].size * 2
                 + (2 * cin * 4 if pre_bn else 0)
                 + (0 if use_bn else cout * 4)
                 + cout * N * H * W * (2 if use_bn else 4)
                 + (G * 2 * cout * 4 if use_bn else 0))

    kern = functools.partial(_conv_kernel, B=B, H=H, W=W, K=K, pad=pad,
                             use_bn=use_bn, act=act, pre_bn=pre_bn, unpool=unpool)
    return pl.pallas_call(
        kern,
        grid=(G,),
        in_specs=in_specs,
        out_specs=out_specs,
        out_shape=out_shape,
        scratch_shapes=[pltpu.VMEM((cin, B, H + 2 * pad, W + 2 * pad), jnp.bfloat16)],
        compiler_params=_compiler_params(),
        cost_estimate=pl.CostEstimate(
            flops=flops, transcendentals=transc, bytes_accessed=bytes_acc),
    )(*args)


def bn_relu_pool(pre, scale, shift, *, N, H, W):
    """Fused BN-apply + ReLU + MaxPool2d(2,2).  pre: (C, N*H*W) bf16 pre-BN."""
    C, L = pre.shape
    assert L == N * H * W
    h, w = H // 2, W // 2
    # Pick B off the *output* resolution so both in/out block widths are legal.
    B = _pick_btile(N, h * w)
    G = N // B

    flops = 8 * C * N * H * W  # BN mul-add + relu + pool maxes/compares (rough)
    bytes_acc = pre.size * 2 + 2 * C * 4 + C * N * h * w * (2 + 1)
    return pl.pallas_call(
        functools.partial(_bn_relu_pool_kernel, B=B, H=H, W=W),
        grid=(G,),
        in_specs=[
            pl.BlockSpec((C, B * H * W), lambda i: (0, i)),
            pl.BlockSpec((C, 1), lambda i: (0, 0)),
            pl.BlockSpec((C, 1), lambda i: (0, 0)),
        ],
        out_specs=(
            pl.BlockSpec((C, B * h * w), lambda i: (0, i)),
            pl.BlockSpec((C, B * h * w), lambda i: (0, i)),
        ),
        out_shape=(
            jax.ShapeDtypeStruct((C, N * h * w), jnp.bfloat16),
            jax.ShapeDtypeStruct((C, N * h * w), _CODE_DTYPE),
        ),
        compiler_params=_compiler_params(),
        cost_estimate=pl.CostEstimate(
            flops=flops, transcendentals=0, bytes_accessed=bytes_acc),
    )(pre, scale, shift)


def _bn_scale_shift(stats, gamma, beta, count, eps=1e-5):
    """Combine per-block [sum, sum_sq] into BN scale/shift (tiny host-side math)."""
    s = jnp.sum(stats[:, 0, :], axis=0)         # (C,)
    sq = jnp.sum(stats[:, 1, :], axis=0)        # (C,)
    mean = s / count
    var = jnp.maximum(sq / count - mean * mean, 0.0)
    scale = gamma[:, 0] * lax.rsqrt(var + eps)
    shift = beta[:, 0] - mean * scale
    return scale[:, None], shift[:, None]       # (C, 1) f32 each


# ----------------------------------------------------------------------------
# Parameter construction (deterministic, synthetic)
# ----------------------------------------------------------------------------
def _conv_layer_params(key, cin, cout, k):
    kw_, kb, kg, kbt = jax.random.split(key, 4)
    fan_in = cin * k * k
    # Weight layout: (Cout, K*K*Cin), row index = (kh*K + kw)*Cin + cin_idx,
    # matching the in-kernel im2col ordering.  Stored bf16 (MXU-native).
    w = (jax.random.normal(kw_, (cout, k * k * cin), jnp.float32)
         / math.sqrt(fan_in)).astype(jnp.bfloat16)
    b = 0.1 * jax.random.normal(kb, (cout, 1), jnp.float32)  # unused under BN
    gamma = 1.0 + 0.1 * jax.random.normal(kg, (cout, 1), jnp.float32)
    beta = 0.1 * jax.random.normal(kbt, (cout, 1), jnp.float32)
    return {"type": "conv", "k": k, "w": w, "b": b, "gamma": gamma, "beta": beta}


def make_params(key, in_ch, enc_cfg, dec_cfg):
    params = {"enc": [], "dec": [], "final": None}
    c = in_ch
    for v in enc_cfg:
        if v == "M":
            params["enc"].append({"type": "pool"})
        else:
            key, sub = jax.random.split(key)
            params["enc"].append(_conv_layer_params(sub, c, v, 3))
            c = v
    # decoder: conv5x5(d0->d0), then (unpool, conv5x5(di->di+1)) blocks
    key, sub = jax.random.split(key)
    params["dec"].append(_conv_layer_params(sub, dec_cfg[0], dec_cfg[0], 5))
    for i in range(len(dec_cfg) - 1):
        params["dec"].append({"type": "unpool"})
        key, sub = jax.random.split(key)
        params["dec"].append(_conv_layer_params(sub, dec_cfg[i], dec_cfg[i + 1], 5))
    key, sub = jax.random.split(key)
    params["final"] = _conv_layer_params(sub, dec_cfg[-1], 1, 5)
    return params


# ----------------------------------------------------------------------------
# Mnet forward
# ----------------------------------------------------------------------------
def mnet_forward(params, x_nchw):
    N, C0, H, W = x_nchw.shape
    # Channel-major with batch folded into the lane dimension: (C, N*H*W).
    x = jnp.transpose(x_nchw, (1, 0, 2, 3)).reshape(C0, N * H * W)
    x = x.astype(jnp.bfloat16)

    codes = []
    pre_scale = pre_shift = None  # pending BN scale/shift fused into the next conv

    # ---- encoder: conv (+fused prev-BN) ; BN+ReLU+pool fused in one pass ----
    enc = params["enc"]
    i = 0
    while i < len(enc):
        layer = enc[i]
        assert layer["type"] == "conv", "each pool must follow a conv layer"
        fuse_pool = (i + 1 < len(enc)) and enc[i + 1]["type"] == "pool"
        pre, stats = conv_pass(x, layer, N=N, H=H, W=W, use_bn=True,
                               pre_scale=pre_scale, pre_shift=pre_shift)
        scale, shift = _bn_scale_shift(stats, layer["gamma"], layer["beta"],
                                       N * H * W)
        if fuse_pool:
            x, code = bn_relu_pool(pre, scale, shift, N=N, H=H, W=W)
            codes.append(code)
            H, W = H // 2, W // 2
            pre_scale = pre_shift = None
            i += 2
        else:
            x = pre                       # bf16 pre-BN; BN+ReLU fused downstream
            pre_scale, pre_shift = scale, shift
            i += 1

    # ---- decoder: unpool fused into the following conv; codes in reverse ----
    codes = codes[::-1]
    ui = 0
    pending_code = None
    for layer in params["dec"]:
        if layer["type"] == "unpool":
            pending_code = codes[ui]
            ui += 1
            continue
        if pending_code is not None:
            assert pending_code.shape[0] == x.shape[0], (
                "unpool channel mismatch: decoder feature map has "
                f"{x.shape[0]} channels but pool indices have {pending_code.shape[0]}")
            H, W = 2 * H, 2 * W
            pre, stats = conv_pass(x, layer, N=N, H=H, W=W, use_bn=True,
                                   pre_scale=pre_scale, pre_shift=pre_shift,
                                   code=pending_code)
            pending_code = None
        else:
            pre, stats = conv_pass(x, layer, N=N, H=H, W=W, use_bn=True,
                                   pre_scale=pre_scale, pre_shift=pre_shift)
        scale, shift = _bn_scale_shift(stats, layer["gamma"], layer["beta"],
                                       N * H * W)
        x = pre
        pre_scale, pre_shift = scale, shift

    # ---- final 5x5 conv -> 1 ch: prev BN+ReLU prologue + bias + sigmoid fused ----
    out = conv_pass(x, params["final"], N=N, H=H, W=W, use_bn=False,
                    act="sigmoid", pre_scale=pre_scale, pre_shift=pre_shift)
    # (1, N*H*W) -> (N, 1, H, W)
    return out.reshape(N, H, W)[:, None, :, :]


# ----------------------------------------------------------------------------
if __name__ == "__main__":
    # Scaled-down config preserving the Mnet invariant: decoder channels at
    # each unpool match the channel count of the corresponding encoder pool
    # (decoder[0] = encoder output channels, etc.), exactly like the VGG
    # config [.., 512] / [512, 256, 128, 64, 64].
    ENC_CFG = [8, 8, "M", 16, 16, "M", 16]
    DEC_CFG = [16, 8, 8]
    IN_CH, BATCH, SPATIAL = 3, 2, 16

    key = jax.random.PRNGKey(0)
    kp, kx = jax.random.split(key)
    params = make_params(kp, IN_CH, ENC_CFG, DEC_CFG)
    x = jax.random.normal(kx, (BATCH, IN_CH, SPATIAL, SPATIAL), jnp.float32)

    out = mnet_forward(params, x)
    out = jax.block_until_ready(out)

    assert out.shape == (BATCH, 1, SPATIAL, SPATIAL), out.shape
    assert bool(jnp.all(jnp.isfinite(out)))
    assert bool(jnp.all((out >= 0.0) & (out <= 1.0)))  # sigmoid output range
    print("KERNEL_OK")
</pallas_src>

<mosaic_0001>
module attributes {stable_mosaic.version = 11 : i64} {
  func.func @_conv_kernel(%arg0: i32, %arg1: memref<3x256xbf16, #tpu.memory_space<vmem>>, %arg2: memref<8x27xbf16, #tpu.memory_space<vmem>>, %arg3: memref<8x256xbf16, #tpu.memory_space<vmem>>, %arg4: memref<1x2x8xf32, #tpu.memory_space<vmem>>, %arg5: memref<3x1x18x18xbf16, #tpu.memory_space<vmem>>) attributes {dimension_semantics = [#tpu.dimension_semantics<parallel>], iteration_bounds = array<i64: 2>, scalar_prefetch = 0 : i64, scratch_operands = 1 : i64, tpu.core_type = #tpu.core_type<tc>, window_params = [{transform_indices = @transform_0, window_bounds = array<i64: 3, 256>}, {pipeline_mode = #tpu.pipeline_mode<synchronous>, transform_indices = @transform_1, window_bounds = array<i64: 8, 27>}, {transform_indices = @transform_2, window_bounds = array<i64: 8, 256>}, {transform_indices = @transform_3, window_bounds = array<i64: 1, 2, 8>}]} {
    %c0 = arith.constant 0 : index
    %c0_0 = arith.constant 0 : index
    %0 = vector.load %arg1[%c0, %c0_0] : memref<3x256xbf16, #tpu.memory_space<vmem>>, vector<3x256xbf16>
    %1 = vector.shape_cast %0 : vector<3x256xbf16> to vector<3x1x16x16xbf16>
    %cst = arith.constant 0.000000e+00 : bf16
    %2 = vector.broadcast %cst : bf16 to vector<3x1x1x18xbf16>
    %c0_1 = arith.constant 0 : index
    %c0_2 = arith.constant 0 : index
    %c0_3 = arith.constant 0 : index
    %c0_4 = arith.constant 0 : index
    %3 = vector.load %arg5[%c0_1, %c0_2, %c0_3, %c0_4] : memref<3x1x18x18xbf16, #tpu.memory_space<vmem>>, vector<3x1x1x18xbf16>
    tpu.vector_store %arg5[%c0_1, %c0_2, %c0_3, %c0_4], %2 {strides = array<i32>} : memref<3x1x18x18xbf16, #tpu.memory_space<vmem>>, vector<3x1x1x18xbf16>,
    %cst_5 = arith.constant 0.000000e+00 : bf16
    %4 = vector.broadcast %cst_5 : bf16 to vector<3x1x1x18xbf16>
    %c0_6 = arith.constant 0 : index
    %c0_7 = arith.constant 0 : index
    %c17 = arith.constant 17 : index
    %c0_8 = arith.constant 0 : index
    %5 = vector.load %arg5[%c0_6, %c0_7, %c17, %c0_8] : memref<3x1x18x18xbf16, #tpu.memory_space<vmem>>, vector<3x1x1x18xbf16>
    tpu.vector_store %arg5[%c0_6, %c0_7, %c17, %c0_8], %4 {strides = array<i32>} : memref<3x1x18x18xbf16, #tpu.memory_space<vmem>>, vector<3x1x1x18xbf16>,
    %cst_9 = arith.constant 0.000000e+00 : bf16
    %6 = vector.broadcast %cst_9 : bf16 to vector<3x1x16x1xbf16>
    %c0_10 = arith.constant 0 : index
    %c0_11 = arith.constant 0 : index
    %c1 = arith.constant 1 : index
    %c0_12 = arith.constant 0 : index
    %7 = vector.load %arg5[%c0_10, %c0_11, %c1, %c0_12] : memref<3x1x18x18xbf16, #tpu.memory_space<vmem>>, vector<3x1x16x1xbf16>
    tpu.vector_store %arg5[%c0_10, %c0_11, %c1, %c0_12], %6 {strides = array<i32>} : memref<3x1x18x18xbf16, #tpu.memory_space<vmem>>, vector<3x1x16x1xbf16>,
    %cst_13 = arith.constant 0.000000e+00 : bf16
    %8 = vector.broadcast %cst_13 : bf16 to vector<3x1x16x1xbf16>
    %c0_14 = arith.constant 0 : index
    %c0_15 = arith.constant 0 : index
    %c1_16 = arith.constant 1 : index
    %c17_17 = arith.constant 17 : index
    %9 = vector.load %arg5[%c0_14, %c0_15, %c1_16, %c17_17] : memref<3x1x18x18xbf16, #tpu.memory_space<vmem>>, vector<3x1x16x1xbf16>
    tpu.vector_store %arg5[%c0_14, %c0_15, %c1_16, %c17_17], %8 {strides = array<i32>} : memref<3x1x18x18xbf16, #tpu.memory_space<vmem>>, vector<3x1x16x1xbf16>,
    %c0_18 = arith.constant 0 : index
    %c0_19 = arith.constant 0 : index
    %c1_20 = arith.constant 1 : index
    %c1_21 = arith.constant 1 : index
    %10 = vector.load %arg5[%c0_18, %c0_19, %c1_20, %c1_21] : memref<3x1x18x18xbf16, #tpu.memory_space<vmem>>, vector<3x1x16x16xbf16>
    tpu.vector_store %arg5[%c0_18, %c0_19, %c1_20, %c1_21], %1 {strides = array<i32>} : memref<3x1x18x18xbf16, #tpu.memory_space<vmem>>, vector<3x1x16x16xbf16>,
    %c0_22 = arith.constant 0 : index
    %c0_23 = arith.constant 0 : index
    %c0_24 = arith.constant 0 : index
    %c0_25 = arith.constant 0 : index
    %11 = vector.load %arg5[%c0_22, %c0_23, %c0_24, %c0_25] : memref<3x1x18x18xbf16, #tpu.memory_space<vmem>>, vector<3x1x16x16xbf16>
    %12 = vector.shape_cast %11 : vector<3x1x16x16xbf16> to vector<3x256xbf16>
    %c0_26 = arith.constant 0 : index
    %c0_27 = arith.constant 0 : index
    %c0_28 = arith.constant 0 : index
    %c1_29 = arith.constant 1 : index
    %13 = vector.load %arg5[%c0_26, %c0_27, %c0_28, %c1_29] : memref<3x1x18x18xbf16, #tpu.memory_space<vmem>>, vector<3x1x16x16xbf16>
    %14 = vector.shape_cast %13 : vector<3x1x16x16xbf16> to vector<3x256xbf16>
    %c0_30 = arith.constant 0 : index
    %c0_31 = arith.constant 0 : index
    %c0_32 = arith.constant 0 : index
    %c2 = arith.constant 2 : index
    %15 = vector.load %arg5[%c0_30, %c0_31, %c0_32, %c2] : memref<3x1x18x18xbf16, #tpu.memory_space<vmem>>, vector<3x1x16x16xbf16>
    %16 = vector.shape_cast %15 : vector<3x1x16x16xbf16> to vector<3x256xbf16>
    %c0_33 = arith.constant 0 : index
    %c0_34 = arith.constant 0 : index
    %c1_35 = arith.constant 1 : index
    %c0_36 = arith.constant 0 : index
    %17 = vector.load %arg5[%c0_33, %c0_34, %c1_35, %c0_36] : memref<3x1x18x18xbf16, #tpu.memory_space<vmem>>, vector<3x1x16x16xbf16>
    %18 = vector.shape_cast %17 : vector<3x1x16x16xbf16> to vector<3x256xbf16>
    %c0_37 = arith.constant 0 : index
    %c0_38 = arith.constant 0 : index
    %c1_39 = arith.constant 1 : index
    %c1_40 = arith.constant 1 : index
    %19 = vector.load %arg5[%c0_37, %c0_38, %c1_39, %c1_40] : memref<3x1x18x18xbf16, #tpu.memory_space<vmem>>, vector<3x1x16x16xbf16>
    %20 = vector.shape_cast %19 : vector<3x1x16x16xbf16> to vector<3x256xbf16>
    %c0_41 = arith.constant 0 : index
    %c0_42 = arith.constant 0 : index
    %c1_43 = arith.constant 1 : index
    %c2_44 = arith.constant 2 : index
    %21 = vector.load %arg5[%c0_41, %c0_42, %c1_43, %c2_44] : memref<3x1x18x18xbf16, #tpu.memory_space<vmem>>, vector<3x1x16x16xbf16>
    %22 = vector.shape_cast %21 : vector<3x1x16x16xbf16> to vector<3x256xbf16>
    %c0_45 = arith.constant 0 : index
    %c0_46 = arith.constant 0 : index
    %c2_47 = arith.constant 2 : index
    %c0_48 = arith.constant 0 : index
    %23 = vector.load %arg5[%c0_45, %c0_46, %c2_47, %c0_48] : memref<3x1x18x18xbf16, #tpu.memory_space<vmem>>, vector<3x1x16x16xbf16>
    %24 = vector.shape_cast %23 : vector<3x1x16x16xbf16> to vector<3x256xbf16>
    %c0_49 = arith.constant 0 : index
    %c0_50 = arith.constant 0 : index
    %c2_51 = arith.constant 2 : index
    %c1_52 = arith.constant 1 : index
    %25 = vector.load %arg5[%c0_49, %c0_50, %c2_51, %c1_52] : memref<3x1x18x18xbf16, #tpu.memory_space<vmem>>, vector<3x1x16x16xbf16>
    %26 = vector.shape_cast %25 : vector<3x1x16x16xbf16> to vector<3x256xbf16>
    %c0_53 = arith.constant 0 : index
    %c0_54 = arith.constant 0 : index
    %c2_55 = arith.constant 2 : index
    %c2_56 = arith.constant 2 : index
    %27 = vector.load %arg5[%c0_53, %c0_54, %c2_55, %c2_56] : memref<3x1x18x18xbf16, #tpu.memory_space<vmem>>, vector<3x1x16x16xbf16>
    %28 = vector.shape_cast %27 : vector<3x1x16x16xbf16> to vector<3x256xbf16>
    %29 = tpu.concatenate %12, %14, %16, %18, %20, %22, %24, %26, %28 in 0 : vector<3x256xbf16>, vector<3x256xbf16>, vector<3x256xbf16>, vector<3x256xbf16>, vector<3x256xbf16>, vector<3x256xbf16>, vector<3x256xbf16>, vector<3x256xbf16>, vector<3x256xbf16> -> vector<27x256xbf16>
    %c0_57 = arith.constant 0 : index
    %c0_58 = arith.constant 0 : index
    %30 = vector.load %arg2[%c0_57, %c0_58] : memref<8x27xbf16, #tpu.memory_space<vmem>>, vector<8x27xbf16>
    %cst_59 = arith.constant dense<0.000000e+00> : vector<8x256xf32>
    %31 = tpu.matmul %30, %29, %cst_59 {dimension_numbers = #tpu.dot_dimension_numbers<[1], [0], [0], [1], [0, 0, 1, 1], [], []>} : vector<8x27xbf16>, vector<27x256xbf16>, vector<8x256xf32> -> vector<8x256xf32>
    %32 = arith.truncf %31 : vector<8x256xf32> to vector<8x256xbf16>
    %c0_60 = arith.constant 0 : index
    %c0_61 = arith.constant 0 : index
    %33 = vector.load %arg3[%c0_60, %c0_61] : memref<8x256xbf16, #tpu.memory_space<vmem>>, vector<8x256xbf16>
    tpu.vector_store %arg3[%c0_60, %c0_61], %32 {strides = array<i32>} : memref<8x256xbf16, #tpu.memory_space<vmem>>, vector<8x256xbf16>,
    %cst_62 = arith.constant dense<0.000000e+00> : vector<8xf32>
    %34 = vector.multi_reduction <add>, %31, %cst_62 [1] : vector<8x256xf32> to vector<8xf32>
    %35 = arith.mulf %31, %31 : vector<8x256xf32>
    %cst_63 = arith.constant dense<0.000000e+00> : vector<8xf32>
    %36 = vector.multi_reduction <add>, %35, %cst_63 [1] : vector<8x256xf32> to vector<8xf32>
    %37 = vector.shape_cast %34 : vector<8xf32> to vector<1x8xf32>
    %38 = vector.shape_cast %36 : vector<8xf32> to vector<1x8xf32>
    %39 = tpu.concatenate %37, %38 in 0 : vector<1x8xf32>, vector<1x8xf32> -> vector<2x8xf32>
    %c0_64 = arith.constant 0 : index
    %c0_65 = arith.constant 0 : index
    %c0_66 = arith.constant 0 : index
    %40 = vector.load %arg4[%c0_64, %c0_65, %c0_66] : memref<1x2x8xf32, #tpu.memory_space<vmem>>, vector<1x2x8xf32>
    %41 = vector.shape_cast %40 : vector<1x2x8xf32> to vector<2x8xf32>
    %42 = vector.shape_cast %39 : vector<2x8xf32> to vector<1x2x8xf32>
    tpu.vector_store %arg4[%c0_64, %c0_65, %c0_66], %42 {strides = array<i32>} : memref<1x2x8xf32, #tpu.memory_space<vmem>>, vector<1x2x8xf32>,
    return
  }
  func.func @transform_0(%arg0: i32) -> (i32, i32) {
    %c0_i32 = arith.constant 0 : i32
    %c0_i32_0 = arith.constant 0 : i32
    return %c0_i32, %arg0 : i32, i32
  }
  func.func @transform_1(%arg0: i32) -> (i32, i32) {
    %c0_i32 = arith.constant 0 : i32
    %c0_i32_0 = arith.constant 0 : i32
    %c0_i32_1 = arith.constant 0 : i32
    return %c0_i32, %c0_i32_0 : i32, i32
  }
  func.func @transform_2(%arg0: i32) -> (i32, i32) {
    %c0_i32 = arith.constant 0 : i32
    %c0_i32_0 = arith.constant 0 : i32
    return %c0_i32, %arg0 : i32, i32
  }
  func.func @transform_3(%arg0: i32) -> (i32, i32, i32) {
    %c0_i32 = arith.constant 0 : i32
    %c0_i32_0 = arith.constant 0 : i32
    %c0_i32_1 = arith.constant 0 : i32
    return %arg0, %c0_i32, %c0_i32_0 : i32, i32, i32
  }
}

</mosaic_0001>

<bundles_post_ra>
// kernel: tpu_custom_call.1
= control target key start
LH: loop header
LB: loop body
LE: loop exit
PB: predicated region body
PF: predicated region fallthrough
CT: control target
= control target key end

     0   :  { %9 = vsyncpa [#allocation4], 0  ;;  %s5506_s0 = inlined_call_operand.hbm [shape: bf16[3,512], index: 0, kind: input, shape index: {}]   ;;  %s5507_s1 = inlined_call_operand.hbm [shape: bf16[8,27], index: 1, kind: input, shape index: {}]   ;;  %s5508_s2 = inlined_call_operand.hbm [shape: bf16[8,512], index: 2, kind: output, shape index: {0}]   ;;  %s5509_s3 = inlined_call_operand.hbm [shape: f32[2,2,8], index: 3, kind: output, shape index: {1}]  }
   0x1   :  { %11 = vsyncpa [#allocation4 + $0x1], 0 }
   0x2   :  { %12 = vsyncpa [#allocation7], 0 }
   0x3   :  { %13 = vsyncpa [#allocation5], 0 }
   0x4   :  { %15 = vsyncpa [#allocation5 + $0x1], 0 }
   0x5   :  { %16 = vsyncpa [#allocation10], 0 }
   0x6   :  { %18 = vsyncpa [#allocation10 + $0x1], 0  ;;  %s3952_s12 = smov 0   ;;  %s3954_s13 = smov 0  }
   0x7   :  { %s3956_s14 = smov 0   ;;  %s3958_s15 = smov 0  }
   0x8 LB: > { %s3973_s16 = sadd.s32 4294967295, %s3912_s15   ;;  %s3451_s17 = sadd.s32 4294967294, %s3912_s15   ;;  %s3912_s15 = sphi %s3958_s15, %s5611_s15   ;;  %s3908_s14 = sphi %s3956_s14, %s5610_s14   ;;  %s3904_s13 = sphi %s3954_s13, %s5609_s13   ;;  %s3900_s12 = sphi %s3952_s12, %s5608_s12  }
   0x9   : > { %p44_p0 = scmp.ne.s32.totalorder %s3904_s13, %s3900_s12  ;;  %p5510_p1 = scmp.eq.s32.totalorder %s3973_s16, 0 }
   0xa   : > { %p95_p3 = scmp.eq.s32.totalorder %s3451_s17, 1  ;;  %p3452_p5 = scmp.ge.s32.totalorder %s3912_s15, 1 }
   0xb   : > { %p3982_p4 = por %p5510_p1, %p44_p0  ;;  %p128_p7 = scmp.lt.s32.totalorder %s3912_s15, 3 }
   0xc   : > { %p3987_p6 = por %p95_p3, %p44_p0  ;;  %s3914_s21 = smov [#allocation6]  }
   0xd   : > { %s5523_s18 = scalar_select %p3982_p4, 1, 0 }
   0xe   : > { %s5524_s19 = scalar_select %p3987_p6, 1, 0 }
   0xf   : > { %p3992_p8 = pnand %p3452_p5, %p128_p7  ;;  %s141_s22 = sshll.u32 %s3914_s21, 4  ;;  %s142_s22 = int_to_ptr.vmem [resolvable:$true] %s141_s22 }
  0x10   : > { %s4000_s23 = sadd.s32 1, %s3912_s15   ;;  %s31_s27 = sadd.s32 1, %s3908_s14 }
  0x11   : > { %s5525_s20 = scalar_select %p3992_p8, 1, 0 }
  0x12   : > { %p3686_p10 = pneg %p3992_p8  ;;  %s28_s25 = ssub.s32 %s3912_s15, %s4000_s23 }
  0x13   : > { %p4010_p12 = scmp.eq.s32.totalorder %s28_s25, 0  ;;  %s3752_s30 = scalar_lea.hbm %s5507_s1, 64 }
  0x14   : > { %p4004_p11 = pnand %p3686_p10, %p5510_p1  ;;  %p3753_p0 = scmp.ne.s32.totalorder %s5507_s1, %s3752_s30 }
  0x15   : > { %s5527_s26 = scalar_select %p4010_p12, 1, 0 }
  0x16   : > { %p3754_p3 = pneg %p4004_p11  ;;  %p3759_p10 = scmp.lt.u32.totalorder %s3752_s30, %s5507_s1 }
  0x18   : > { %p3755_p5 = pnand %p3754_p3, %p3753_p0 }
  0x1a   : > { %p3756_p7 = pneg %p3755_p5 }
  0x1c   : > { %p3761_p9 = pnand %p3759_p10, %p3756_p7 }
  0x1e   : > { %3764 = shalt.err (!%p3761_p9)
}
  0x1f   : > { %s3765_s8 = scalar_lea.vmem %s142_s22, 64  ;;  %p3773_p6 = scmp.lt.s32.totalorder %s142_s22, %s142_s22 }
  0x20   : > { %p3766_p1 = scmp.ne.s32.totalorder %s142_s22, %s3765_s8  ;;  %p3774_p4 = scmp.lt.s32.totalorder %s3765_s8, %s3765_s8 }
  0x22   : > { %p3768_p2 = pnand %p3766_p1, %p3754_p3  ;;  %p3775_p8 = por %p3774_p4, %p3773_p6 }
  0x24   : > { %p3769_p13 = pneg %p3768_p2 }
  0x26   : > { %p3776_p12 = pnand %p3775_p8, %p3769_p13 }
  0x28   : > { %3779 = shalt.err (!%p3776_p12)
}
  0x29   : > { %3689 = dma.hbm_to_vmem [thread:$0]  (!%p4004_p11), %s5507_s1, 64, %s142_s22, [#allocation7]  }
  0x2a   : > { %p5528_p1 = scmp.ne.s32.totalorder %s5527_s26, 0  ;;  %p39_p2 = scmp.eq.s32.totalorder %s3912_s15, 0 }
  0x2b   : > { %p5529_p4 = scmp.ne.s32.totalorder %s3908_s14, %s3904_s13  ;;  %p5530_p6 = scmp.eq.s32.totalorder %s3973_s16, 1 }
  0x2c   : > { %s4036_s11 = scalar_select %p5528_p1, %s3908_s14, %s31_s27  }
  0x2d   : > { %p4044_p8 = por %p5530_p6, %p5529_p4  ;;  %p3702_p9 = scmp.lt.s32.totalorder %s3912_s15, 2 }
  0x2e   : > { %s152_s21 = sand.u32 1, %s3908_s14   ;;  %p5532_p12 = pmov %p5529_p4 }
  0x2f   : > { %s3455_s24 = sshll.u32 %s152_s21, 2  ;;  %s3601_s25 = sshll.u32 %s3912_s15, 6 }
  0x30   : > { %p40_p13 = por %p39_p2, %p5532_p12  ;;  %s4057_s22 = scalar_lea.hbm %s5506_s0, %s3601_s25 }
  0x31   : > { %s156_s26 = scalar_lea.vmem [#allocation3], %s3455_s24  ;;  %s153_s4 = scalar_lea.sflag [#allocation4], %s152_s21 }
  0x32   : > { %s164_s27 = sshll.u32 %s156_s26, 4  ;;  %p4059_p11 = pnand %p3702_p9, %p40_p13  ;;  %s4063_s27 = int_to_ptr.vmem [resolvable:$true] %s164_s27 }
  0x33   : > { %s3780_s5 = scalar_lea.hbm %s4057_s22, 64  ;;  %s3785_s8 = scalar_lea.hbm %s5506_s0, 128 }
  0x34   : > { %p3781_p0 = scmp.ne.s32.totalorder %s4057_s22, %s3780_s5  ;;  %p3782_p3 = pneg %p4059_p11 }
  0x35   : > { %p3786_p10 = scmp.lt.u32.totalorder %s4057_s22, %s5506_s0  ;;  %p3787_p1 = scmp.lt.u32.totalorder %s3785_s8, %s3780_s5 }
  0x36   : > { %p3783_p5 = pnand %p3782_p3, %p3781_p0  ;;  %p3789_p4 = scmp.lt.u32.totalorder %s3780_s5, %s4057_s22 }
  0x37   : > { %p3788_p2 = por %p3787_p1, %p3786_p10 }
  0x38   : > { %p3784_p7 = pneg %p3783_p5 }
  0x39   : > { %p3790_p6 = por %p3789_p4, %p3788_p2 }
  0x3b   : > { %p3791_p9 = pnand %p3790_p6, %p3784_p7 }
  0x3d   : > { %3794 = shalt.err (!%p3791_p9)
}
  0x3e   : > { %s3795_s21 = scalar_lea.vmem %s4063_s27, 64  ;;  %s3915_s24 = smov [#allocation3]  }
  0x3f   : > { %p3796_p12 = scmp.ne.s32.totalorder %s4063_s27, %s3795_s21  ;;  %s3800_s25 = sshll.u32 %s3915_s24, 4  ;;  %s3801_s25 = int_to_ptr.vmem [resolvable:$false] %s3800_s25 }
  0x40   : > { %s3802_s28 = scalar_lea.vmem %s3801_s25, 128  ;;  %p3803_p5 = scmp.lt.s32.totalorder %s4063_s27, %s3801_s25 }
  0x41   : > { %p3798_p13 = pnand %p3796_p12, %p3782_p3  ;;  %p3804_p10 = scmp.lt.s32.totalorder %s3802_s28, %s3795_s21 }
  0x43   : > { %p3799_p0 = pneg %p3798_p13  ;;  %p3805_p1 = por %p3804_p10, %p3803_p5 }
  0x45   : > { %p3806_p2 = pnand %p3805_p1, %p3799_p0 }
  0x47   : > { %3809 = shalt.err (!%p3806_p2)
}
  0x48   : > { %3693 = dma.hbm_to_vmem [thread:$0]  (!%p4059_p11), %s4057_s22, 64, %s4063_s27, %s153_s4  }
  0x49   : > { %p5534_p7 = scmp.ne.s32.totalorder %s5525_s20, 0 }
  0x4b   : > { %173 = sbr.rel (%p5534_p7) target bundleno = 1182 (0x49e), region = 28 }
  0x52   : > { %s4093_s29 = sand.u32 1, %s3904_s13   ;;  %p5535_p3 = scmp.ne.s32.totalorder %s5523_s18, 0 }
  0x53   : > { %s3459_s26 = sshll.u32 %s4093_s29, 2  ;;  %s176_s5 = scalar_lea.sflag [#allocation4], %s4093_s29 }
  0x54   : > { %s179_s6 = scalar_lea.vmem [#allocation3], %s3459_s26 }
  0x55   : > { %3883 = dma.done.wait (%p5535_p3), %s176_s5, 64  }
  0x56   : > { %3885 = vsyncadd (%p5535_p3), %s176_s5, 4294967232  ;;  %p5536_p4 = scmp.eq.s32.totalorder %s3973_s16, 0 }
  0x58   : > { %3887 = dma.done.wait (%p5536_p4), [#allocation7], 64   ;;  %p5537_p11 = pmov %p5536_p4 }
  0x59   : > { %v5516_v0 = vmov 0   ;;  %v4106_v1 = vld [vmem:[%s179_s6] sm:$0xf]  ;;  %s3917_s20 = smov 80   ;;  %s3918_s22 = smov 112   ;;  %vm361_vm1 = vcmask 139264   ;;  %v5513_v36 = vlaneseq }
  0x5a   : > { %3889 = vsyncadd (%p5537_p11), [#allocation7], 4294967232  ;;  %3263 = vmatprep.mubr.bf16.mxu0 %v5516_v0  ;;  %226 = vrot.lane.b32.xlu1 %v4106_v1, %s3917_s20  ;;  %s3919_s18 = smov 64   ;;  %s3920_s27 = smov 96   ;;  %vm362_vm0 = vsmask.f32 256 }
  0x5b   : > { %218 = vrot.lane.b32.xlu0 %v4106_v1, %s3918_s22  ;;  %s3921_s30 = smov 32   ;;  %s3922_s4 = smov 48   ;;  %v364_v2 = vld [vmem:[#allocation2] sm:$0x1]  ;;  %v367_v3 = vld [vmem:[#allocation2 + $0xc] sm:$0x1]  ;;  %vm363_vm3 = vmand %vm361_vm1, %vm362_vm0 }
  0x5c   : > { %s3923_s7 = smov 16   ;;  %vm384_vm2 = vcmask 3072   ;;  %v370_v4 = vld [vmem:[#allocation2 + $0x18] sm:$0x1]  ;;  %vm373_vm4 = vsmask.f32 7938 }
  0x5d   : > { %v375_v5 = vld [vmem:[#allocation2 + $0x8] sm:$0x1]  ;;  %390 = vst.msk [vmem:[#allocation2 + $0x4] sm:$0xf] %vm384_vm2, %v5516_v0  ;;  %399 = vst.msk [vmem:[#allocation2 + $0x10] sm:$0xf] %vm384_vm2, %v5516_v0 }
  0x5e   : > { %230 = vrot.lane.b32.xlu1 %v4106_v1, %s3919_s18  ;;  %406 = vst.msk [vmem:[#allocation2 + $0x1c] sm:$0xf] %vm384_vm2, %v5516_v0  ;;  %v365_v6 = vsel %vm363_vm3, 0, %v364_v2  ;;  %v368_v7 = vsel %vm363_vm3, 0, %v367_v3  ;;  %v371_v8 = vsel %vm363_vm3, 0, %v370_v4  ;;  %vm374_vm5 = vmand %vm361_vm1, %vm373_vm4  ;;  %vm410_vm6 = vcmask 142472  }
  0x5f   : > { %222 = vrot.lane.b32.xlu0 %v4106_v1, %s3920_s27  ;;  %v378_v9 = vld [vmem:[#allocation2 + $0x14] sm:$0x1]  ;;  %366 = vst [vmem:[#allocation2] sm:$0x1] %v365_v6  ;;  %369 = vst [vmem:[#allocation2 + $0xc] sm:$0x1] %v368_v7 }
  0x60   : > { %372 = vst [vmem:[#allocation2 + $0x18] sm:$0x1] %v371_v8  ;;  %v376_v10 = vsel %vm374_vm5, 0, %v375_v5  ;;  %v379_v11 = vsel %vm374_vm5, 0, %v378_v9  ;;  %v381_v12 = vld [vmem:[#allocation2 + $0x20] sm:$0x1]  ;;  %vm4138_vm8 = vmand %vm384_vm2, %vm373_vm4 }
  0x61   : > { %416 = vst.msk [vmem:[#allocation2 + $0x4] sm:$0xf] %vm410_vm6, %v5516_v0  ;;  %425 = vst.msk [vmem:[#allocation2 + $0x10] sm:$0xf] %vm410_vm6, %v5516_v0  ;;  %v382_v13 = vsel %vm374_vm5, 0, %v381_v12  ;;  %vm391_vm7 = vcmask 0  }
  0x62   : > { %238 = vrot.lane.b32.xlu1 %v4106_v1, %s3921_s30  ;;  %432 = vst.msk [vmem:[#allocation2 + $0x1c] sm:$0xf] %vm410_vm6, %v5516_v0  ;;  %377 = vst [vmem:[#allocation2 + $0x8] sm:$0x1] %v376_v10  ;;  %v3924_v34 = vmov 1934713408  }
  0x63   : > { %234 = vrot.lane.b32.xlu0 %v4106_v1, %s3922_s4  ;;  %380 = vst [vmem:[#allocation2 + $0x14] sm:$0x1] %v379_v11  ;;  %383 = vst [vmem:[#allocation2 + $0x20] sm:$0x1] %v382_v13  ;;  %v255_v35 = vunpack.c.l.s4 %v3924_v34  ;;  %v4162_v39 = vshrl.u32 %v5513_v36, 7  ;;  %v216_v49 = vrot.slane %v4106_v1, 2 }
  0x64   : > { %vm4143_vm9 = vmand %vm391_vm7, %vm362_vm0  ;;  %v3925_v43 = vmov 1983009808   ;;  %vm417_vm11 = vcmask 139400   ;;  %vm484_vm13 = vsmask.f32 4368  ;;  %s3926_s8 = smov 1  }
  0x65   : > { %vm411_vm10 = vmand %vm410_vm6, %vm373_vm4  ;;  %v256_v38 = vunpack.c.0.s8 %v255_v35  ;;  %5542 = vst [vmem:[#allocation15_spill] sm:$0xff] %v4162_v39  ;;  %v438_v44 = vunpack.c.l.s4 %v3925_v43  ;;  %vm564_vm15 = vcmask 134152   ;;  %vm571_vm2 = vcmask 131080   ;;  %s3927_s9 = smov 127   ;;  %s3928_s10 = smov 126  }
  0x66   : > { %v386_v16 = vld [vmem:[#allocation2] sm:$0xf]  ;;  %v396_v17 = vld [vmem:[#allocation2 + $0xc] sm:$0xf]  ;;  %vm4186_vm12 = vmand %vm417_vm11, %vm362_vm0  ;;  %vm1408_vm6 = vsmask.f32 3328 }
  0x67   : > { %242 = vrot.lane.b32.xlu0 %v4106_v1, %s3923_s7  ;;  %v403_v18 = vld [vmem:[#allocation2 + $0x18] sm:$0xf]  ;;  %v387_v19 = vsel %vm4138_vm8, 0, %v386_v16  ;;  %v397_v21 = vsel %vm4138_vm8, 0, %v396_v17  ;;  %v4165_v45 = vsub.s32 %v256_v38, %v4162_v39  ;;  %v439_v54 = vunpack.c.0.s8 %v438_v44  ;;  %vm4203_vm14 = vmor %vm362_vm0, %vm484_vm13  ;;  %s3461_s21 = sshll.u32 %s4093_s29, 3  ;;  %s3675_s25 = sshll.u32 %s3973_s16, 7 }
  0x68   : > { %388 = vst [vmem:[#allocation2] sm:$0xf] %v387_v19  ;;  %398 = vst [vmem:[#allocation2 + $0xc] sm:$0xf] %v397_v21  ;;  %v404_v25 = vsel %vm4138_vm8, 0, %v403_v18  ;;  %vm831_vm11 = vcmask 392192   ;;  %s5434_s5 = scalar_lea.hbm %s5508_s2, %s3675_s25 }
  0x69   : > { %v393_v20 = vld [vmem:[#allocation2 + $0x8] sm:$0x1]  ;;  %405 = vst [vmem:[#allocation2 + $0x18] sm:$0xf] %v404_v25  ;;  %v4174_v3 = vsub.s32 %v439_v54, %v4162_v39  ;;  %vm4228_vm1 = vmand %vm564_vm15, %vm373_vm4  ;;  %vm2273_vm4 = vcmask 1046532   ;;  %vm837_vm13 = vcmask 654336  }
  0x6a   : > { %v400_v22 = vld [vmem:[#allocation2 + $0x14] sm:$0x1]  ;;  %v394_v23 = vsel %vm4143_vm9, 0, %v393_v20  ;;  %v407_v26 = vld [vmem:[#allocation2 + $0x20] sm:$0x1]  ;;  %vm4236_vm3 = vmand %vm571_vm2, %vm362_vm0  ;;  %vm2272_vm0 = vcmask 1042432  }
  0x6b   : > { %v401_v24 = vsel %vm4143_vm9, 0, %v400_v22  ;;  %395 = vst [vmem:[#allocation2 + $0x8] sm:$0x1] %v394_v23  ;;  %v408_v27 = vsel %vm4143_vm9, 0, %v407_v26  ;;  %vm4263_vm5 = vmor %vm2272_vm0, %vm2273_vm4  ;;  %vm1409_vm7 = vsmask.f32 7440 }
  0x6c   : > { %402 = vst [vmem:[#allocation2 + $0x14] sm:$0x1] %v401_v24  ;;  %409 = vst [vmem:[#allocation2 + $0x20] sm:$0x1] %v408_v27  ;;  %vm824_vm9 = vcmask 130048   ;;  %vm3180_vm4 = vcmask 1044480  }
  0x6d   : > { %vm4323_vm8 = vmor %vm1408_vm6, %vm1409_vm7  ;;  %vm3167_vm2 = vsmask.f32 1280  ;;  %vm3185_vm7 = vcmask 1045504   ;;  %s203_s24 = scalar_lea.vmem [#allocation8], %s3461_s21 }
  0x6e   : > { %s3326_s6 = sshll.u32 %s203_s24, 4  ;;  %s3327_s6 = int_to_ptr.vmem [resolvable:$true] %s3326_s6 }
  0x6f   : > { %v412_v28 = vld [vmem:[#allocation2] sm:$0xf]  ;;  %v422_v29 = vld [vmem:[#allocation2 + $0xc] sm:$0xf] }
  0x70   : > { %v413_v30 = vsel %vm411_vm10, 0, %v412_v28  ;;  %v423_v31 = vsel %vm411_vm10, 0, %v422_v29  ;;  %v429_v32 = vld [vmem:[#allocation2 + $0x18] sm:$0xf] }
  0x71   : > { %414 = vst [vmem:[#allocation2] sm:$0xf] %v413_v30  ;;  %424 = vst [vmem:[#allocation2 + $0xc] sm:$0xf] %v423_v31  ;;  %v430_v33 = vsel %vm411_vm10, 0, %v429_v32  ;;  %vm828_vm10 = vcmask 261120  }
  0x72   : > { %431 = vst [vmem:[#allocation2 + $0x18] sm:$0xf] %v430_v33 }
  0x73   : > { %v426_v32 = vld [vmem:[#allocation2 + $0x14] sm:$0x1] }
  0xcc   : > { %v227_v37 = vpop.permute.xlu1 %226 }
  0xcd   : > { %v219_v40 = vpop.permute.xlu0 %218  ;;  %v228_v41 = vrot.slane %v227_v37, 2 }
  0xce   : > { %v220_v42 = vrot.slane %v219_v40, 2  ;;  %v262_v46 = vcombine.low %v219_v40, %v227_v37  ;;  %v427_v37 = vsel %vm4186_vm12, 0, %v426_v32 }
  0xcf   : > { %428 = vst [vmem:[#allocation2 + $0x14] sm:$0x1] %v427_v37 }
  0xd0   : > { %v231_v47 = vpop.permute.xlu1 %230  ;;  %v298_v50 = vcombine.low %v220_v42, %v228_v41  ;;  %v269_v55 = vrot.slane %v262_v46, %v4165_v45 }
  0xd1   : > { %v223_v48 = vpop.permute.xlu0 %222  ;;  %v232_v53 = vrot.slane %v231_v47, 2 }
  0xd2   : > { %v224_v51 = vrot.slane %v223_v48, 2  ;;  %v253_v52 = vcombine.low %v4106_v1, %v223_v48  ;;  %v305_v62 = vrot.slane %v298_v50, %v4165_v45  ;;  %v270_v1 = vcombine.high %v269_v55, %v5516_v0 }
  0xd3   : > { %v329_v12 = vshrl.u32 %v269_v55, 16 }
  0xd4   : > { %v260_v56 = vrot.slane %v253_v52, %v4165_v45  ;;  %v289_v57 = vcombine.low %v216_v49, %v224_v51  ;;  %v239_v58 = vpop.permute.xlu1 %238  ;;  %v306_v11 = vcombine.high %v305_v62, %v5516_v0  ;;  %v347_v13 = vshrl.u32 %v305_v62, 16 }
  0xd5   : > { %v235_v59 = vpop.permute.xlu0 %234  ;;  %v240_v60 = vrot.slane %v239_v58, 2  ;;  %v271_v61 = vcombine.low %v231_v47, %v239_v58 }
  0xd6   : > { %v296_v63 = vrot.slane %v289_v57, %v4165_v45  ;;  %v328_v4 = vshrl.u32 %v260_v56, 16  ;;  %v236_v9 = vrot.slane %v235_v59, 2  ;;  %v261_v15 = vcombine.high %v260_v56, %v5516_v0 }
  0xd7   : > { %v307_v2 = vcombine.low %v232_v53, %v240_v60  ;;  %v278_v5 = vrot.slane %v271_v61, %v4165_v45  ;;  %v327_v16 = vpack.i.b16 %v269_v55, %v260_v56 }
  0xd8   : > { %v297_v7 = vcombine.high %v296_v63, %v5516_v0  ;;  %v345_v17 = vpack.i.b16 %v305_v62, %v296_v63  ;;  %v346_v19 = vshrl.u32 %v296_v63, 16  ;;  %v330_v23 = vpack.i.b16 %v329_v12, %v328_v4 }
  0xd9   : > { %v243_v6 = vpop.permute.xlu0 %242  ;;  %v314_v8 = vrot.slane %v307_v2, %v4165_v45  ;;  %v279_v20 = vcombine.high %v278_v5, %v5516_v0  ;;  %v337_v26 = vshrl.u32 %v278_v5, 16  ;;  %v333_v41 = vpack.i.b16 %v270_v1, %v261_v15 }
  0xda   : > { %v244_v10 = vrot.slane %v243_v6, 2  ;;  %v280_v14 = vcombine.low %v235_v59, %v243_v6  ;;  %v351_v24 = vpack.i.b16 %v306_v11, %v297_v7  ;;  %v348_v46 = vpack.i.b16 %v347_v13, %v346_v19  ;;  %v433_v11 = vld [vmem:[#allocation2 + $0x20] sm:$0x1] }
  0xdb   : > { %v315_v25 = vcombine.high %v314_v8, %v5516_v0  ;;  %v355_v28 = vshrl.u32 %v314_v8, 16  ;;  %v434_v19 = vsel %vm4186_vm12, 0, %v433_v11 }
  0xdc   : > { %v316_v18 = vcombine.low %v236_v9, %v244_v10  ;;  %v287_v21 = vrot.slane %v280_v14, %v4165_v45  ;;  %v419_v10 = vld [vmem:[#allocation2 + $0x8] sm:$0x1]  ;;  %435 = vst [vmem:[#allocation2 + $0x20] sm:$0x1] %v434_v19 }
  0xde   : > { %v323_v27 = vrot.slane %v316_v18, %v4165_v45  ;;  %v288_v29 = vcombine.high %v287_v21, %v5516_v0  ;;  %v336_v30 = vpack.i.b16 %v287_v21, %v278_v5  ;;  %v338_v31 = vshrl.u32 %v287_v21, 16 }
  0xdf   : > { %v420_v18 = vsel %vm4186_vm12, 0, %v419_v10  ;;  %vm834_vm12 = vcmask 523264  }
  0xe0   : > { %v324_v33 = vcombine.high %v323_v27, %v5516_v0  ;;  %v354_v34 = vpack.i.b16 %v323_v27, %v314_v8  ;;  %v356_v35 = vshrl.u32 %v323_v27, 16  ;;  %v436_v38 = vcombine.low %v327_v16, %v336_v30  ;;  %421 = vst [vmem:[#allocation2 + $0x8] sm:$0x1] %v420_v18 }
  0xe1   : > { %v339_v40 = vpack.i.b16 %v338_v31, %v337_v26  ;;  %v342_v42 = vpack.i.b16 %v288_v29, %v279_v20 }
  0xe2   : > { %v360_v43 = vpack.i.b16 %v324_v33, %v315_v25  ;;  %v444_v44 = vcombine.low %v345_v17, %v354_v34  ;;  %v357_v47 = vpack.i.b16 %v356_v35, %v355_v28  ;;  %v443_v48 = vrot.slane %v436_v38, %v4174_v3  ;;  %v566_v35 = vld [vmem:[#allocation2] sm:$0xf] }
  0xe3   : > { %v452_v49 = vcombine.low %v330_v23, %v339_v40  ;;  %v468_v50 = vcombine.low %v333_v41, %v342_v42  ;;  %v576_v41 = vld [vmem:[#allocation2 + $0xc] sm:$0xf] }
  0xe4   : > { %v451_v51 = vrot.slane %v444_v44, %v4174_v3  ;;  %v460_v52 = vcombine.low %v348_v46, %v357_v47  ;;  %v476_v53 = vcombine.low %v351_v24, %v360_v43  ;;  %v487_v54 = vshrl.u32 %v443_v48, 16  ;;  %v580_v44 = vld [vmem:[#allocation2 + $0x14] sm:$0x1] }
  0xe5   : > { %v459_v55 = vrot.slane %v452_v49, %v4174_v3  ;;  %v475_v56 = vrot.slane %v468_v50, %v4174_v3  ;;  %v490_v60 = vshll.u32 %v443_v48, 16  ;;  %v583_v48 = vld [vmem:[#allocation2 + $0x18] sm:$0xf] }
  0xe6   : > { %v495_v57 = vshrl.u32 %v451_v51, 16  ;;  %v467_v58 = vrot.slane %v460_v52, %v4174_v3  ;;  %v489_v59 = vrot.slane %v487_v54, 7  ;;  %v498_v63 = vshll.u32 %v451_v51, 16 }
  0xe7   : > { %v504_v61 = vshrl.u32 %v459_v55, 16  ;;  %v483_v1 = vrot.slane %v476_v53, %v4174_v3  ;;  %v521_v7 = vshrl.u32 %v475_v56, 16  ;;  %v507_v12 = vshll.u32 %v459_v55, 16  ;;  %v573_v54 = vld [vmem:[#allocation2 + $0x8] sm:$0x1] }
  0xe8   : > { %v497_v62 = vrot.slane %v495_v57, 7  ;;  %v512_v2 = vshrl.u32 %v467_v58, 16  ;;  %v492_v4 = vor.u32 %v490_v60, %v489_v59  ;;  %v493_v8 = vrot.slane %v489_v59, 4 }
  0xe9   : > { %v506_v6 = vrot.slane %v504_v61, 7  ;;  %v529_v15 = vshrl.u32 %v483_v1, 16  ;;  %v523_v17 = vrot.slane %v521_v7, 7  ;;  %v515_v20 = vshll.u32 %v467_v58, 16 }
  0xea   : > { %v500_v9 = vor.u32 %v498_v63, %v497_v62  ;;  %537 = vrot.lane.b32.xlu1 %v492_v4, %s3926_s8  ;;  %v514_v13 = vrot.slane %v512_v2, 7  ;;  %v524_v23 = vshll.u32 %v475_v56, 16  ;;  %v532_v28 = vshll.u32 %v483_v1, 16  ;;  %v587_v63 = vld [vmem:[#allocation2 + $0x20] sm:$0x1] }
  0xeb   : > { %v509_v16 = vor.u32 %v507_v12, %v506_v6  ;;  %v531_v25 = vrot.slane %v529_v15, 7  ;;  %v510_v27 = vrot.slane %v506_v6, 4  ;;  %v502_v30 = vrot.slane %v497_v62, 4 }
  0xec   : > { %v501_v14 = vsel %vm4203_vm14, %v493_v8, %v500_v9  ;;  %v519_v21 = vrot.slane %v514_v13, 4  ;;  %v517_v24 = vor.u32 %v515_v20, %v514_v13  ;;  %v526_v26 = vor.u32 %v524_v23, %v523_v17 }
  0xed   : > { %539 = vrot.lane.b32.xlu0 %v501_v14, %s3926_s8  ;;  %v534_v29 = vor.u32 %v532_v28, %v531_v25  ;;  %v527_v31 = vrot.slane %v523_v17, 4  ;;  %v536_v33 = vrot.slane %v531_v25, 4 }
  0xee   : > { %543 = vrot.lane.b32.xlu1 %v509_v16, %s3926_s8  ;;  %v518_v22 = vsel %vm4203_vm14, %v510_v27, %v517_v24 }
  0xef   : > { %v535_v32 = vsel %vm4203_vm14, %v527_v31, %v534_v29  ;;  %vm840_vm14 = vcmask 785408  }
  0xf1   : > { %547 = vrot.lane.b32.xlu0 %v519_v21, %s3926_s8 }
  0xf2   : > { %549 = vrot.lane.b32.xlu1 %v526_v26, %s3926_s8 }
  0xf5   : > { %545 = vrot.lane.b32.xlu0 %v518_v22, %s3926_s8 }
  0xf6   : > { %541 = vrot.lane.b32.xlu1 %v502_v30, %s3926_s8 }
  0xf9   : > { %551 = vrot.lane.b32.xlu0 %v535_v32, %s3926_s8 }
  0xfa   : > { %553 = vrot.lane.b32.xlu1 %v536_v33, %s3926_s8 }
 0x15c   : > { %v538_v37 = vpop.permute.xlu1 %537 }
 0x15d   : > { %v567_v38 = vsel %vm4228_vm1, %v538_v37, %v566_v35 }
 0x15e   : > { %568 = vst [vmem:[#allocation2] sm:$0xf] %v567_v38 }
 0x15f   : > { %v540_v40 = vpop.permute.xlu0 %539 }
 0x160   : > { %570 = vst.msk [vmem:[#allocation2 + $0x4] sm:$0xf] %vm564_vm15, %v540_v40  ;;  %v544_v42 = vpop.permute.xlu1 %543 }
 0x161   : > { %v577_v46 = vsel %vm4228_vm1, %v544_v42, %v576_v41 }
 0x162   : > { %578 = vst [vmem:[#allocation2 + $0xc] sm:$0xf] %v577_v46 }
 0x163   : > { %v548_v47 = vpop.permute.xlu0 %547 }
 0x164   : > { %v581_v49 = vsel %vm4236_vm3, %v548_v47, %v580_v44  ;;  %v550_v50 = vpop.permute.xlu1 %549 }
 0x165   : > { %582 = vst [vmem:[#allocation2 + $0x14] sm:$0x1] %v581_v49  ;;  %v584_v51 = vsel %vm4228_vm1, %v550_v50, %v583_v48  ;;  %v4246_v52 = vld [vmem:[#allocation2] sm:$0xf]  ;;  %vm3166_vm1 = vcmask 1041408  }
 0x166   : > { %585 = vst [vmem:[#allocation2 + $0x18] sm:$0xf] %v584_v51  ;;  %869 = vrot.lane.b32.xlu1 %v4246_v52, %s3927_s9  ;;  %1137 = vrot.lane.b32.xlu0 %v4246_v52, %s3928_s10  ;;  %v2263_v57 = vld [vmem:[#allocation2] sm:$0xe]  ;;  %v599_v58 = vshrl.u32 %v4246_v52, 16  ;;  %v1413_v61 = vshll.u32 %v4246_v52, 16 }
 0x167   : > { %v546_v53 = vpop.permute.xlu0 %545  ;;  %v4252_v55 = vld [vmem:[#allocation2 + $0x4] sm:$0xf]  ;;  %v3547_v4 = vrot.slane %v2263_v57, 9 }
 0x168   : > { %579 = vst.msk [vmem:[#allocation2 + $0x10] sm:$0xf] %vm564_vm15, %v546_v53  ;;  %v542_v56 = vpop.permute.xlu1 %541  ;;  %v2277_v60 = vrot.slane %v4252_v55, 5  ;;  %v1412_v10 = vrot.slane %v599_v58, 4  ;;  %v1415_v11 = vrot.slane %v1413_v61, 5  ;;  %v1418_v20 = vshll.u32 %v4252_v55, 16 }
 0x169   : > { %v574_v59 = vsel %vm4236_vm3, %v542_v56, %v573_v54  ;;  %v4268_v1 = vld [vmem:[#allocation2 + $0xc] sm:$0xf]  ;;  %v611_v21 = vshrl.u32 %v4252_v55, 16 }
 0x16a   : > { %575 = vst [vmem:[#allocation2 + $0x8] sm:$0x1] %v574_v59  ;;  %871 = vrot.lane.b32.xlu0 %v4252_v55, %s3927_s9  ;;  %v2264_v6 = vld [vmem:[#allocation2 + $0xc] sm:$0xe]  ;;  %v4276_v9 = vsel %vm4263_vm5, %v3547_v4, %v2277_v60  ;;  %v600_v12 = vshrl.u32 %v4268_v1, 16  ;;  %v1433_v15 = vshll.u32 %v4268_v1, 16  ;;  %v1416_v25 = vor.u32 %v1415_v11, %v1412_v10 }
 0x16b   : > { %v552_v62 = vpop.permute.xlu0 %551  ;;  %v3548_v16 = vrot.slane %v2264_v6, 9  ;;  %v2299_v18 = vshrl.u32 %v4276_v9, 16  ;;  %v2279_v19 = vrot.slane %v2277_v60, 4  ;;  %v1420_v40 = vrot.slane %v1418_v20, 5 }
 0x16c   : > { %586 = vst.msk [vmem:[#allocation2 + $0x1c] sm:$0xf] %vm564_vm15, %v552_v62  ;;  %v554_v5 = vpop.permute.xlu1 %553  ;;  %v1406_v14 = vld [vmem:[#allocation2 + $0x14] sm:$0x1]  ;;  %v1432_v29 = vrot.slane %v600_v12, 4  ;;  %v1435_v30 = vrot.slane %v1433_v15, 5 }
 0x16d   : > { %v588_v7 = vsel %vm4236_vm3, %v554_v5, %v587_v63  ;;  %v4272_v8 = vld [vmem:[#allocation2 + $0x18] sm:$0xf]  ;;  %v2287_v27 = vrot.slane %v1406_v14, 5  ;;  %v1417_v38 = vrot.slane %v1416_v25, 4  ;;  %v1423_v41 = vrot.slane %v611_v21, 4  ;;  %vm5224_vm3 = vmand %vm3166_vm1, %vm3167_vm2 }
 0x16e   : > { %589 = vst [vmem:[#allocation2 + $0x20] sm:$0x1] %v588_v7  ;;  %877 = vrot.lane.b32.xlu1 %v4272_v8, %s3927_s9  ;;  %873 = vrot.lane.b32.xlu0 %v4268_v1, %s3927_s9  ;;  %v1436_v43 = vor.u32 %v1435_v30, %v1432_v29  ;;  %v1447_v57 = vshll.u32 %v1406_v14, 16  ;;  %v605_v5 = vshrl.u32 %v4272_v8, 16  ;;  %v1453_v7 = vshll.u32 %v4272_v8, 16 }
 0x16f   : > { %v4285_v13 = vld [vmem:[#allocation2 + $0x10] sm:$0xf]  ;;  %v4331_v49 = vsel %vm4323_vm8, %v1417_v38, %v1420_v40  ;;  %v1424_v50 = vor.u32 %v1423_v41, %v1420_v40  ;;  %v2265_v29 = vld [vmem:[#allocation2 + $0x18] sm:$0xe]  ;;  %vm843_vm15 = vcmask 916480  }
 0x170   : > { %v2284_v17 = vrot.slane %v4285_v13, 5  ;;  %v1438_v44 = vshll.u32 %v4285_v13, 16  ;;  %v612_v48 = vshrl.u32 %v4285_v13, 16  ;;  %v1437_v51 = vrot.slane %v1436_v43, 4 }
 0x171   : > { %v1405_v24 = vld [vmem:[#allocation2 + $0x8] sm:$0x1]  ;;  %v1474_v59 = vshrl.u32 %v4331_v49, 16  ;;  %v1425_v62 = vrot.slane %v1424_v50, 4  ;;  %v1449_v15 = vrot.slane %v1447_v57, 5  ;;  %v1455_v25 = vrot.slane %v1453_v7, 5 }
 0x172   : > { %v4294_v23 = vsel %vm4263_vm5, %v3548_v16, %v2284_v17  ;;  %v2286_v26 = vrot.slane %v2284_v17, 4  ;;  %1139 = vrot.lane.b32.xlu1 %v4252_v55, %s3928_s10  ;;  %1145 = vrot.lane.b32.xlu0 %v4272_v8, %s3928_s10  ;;  %v2280_v22 = vrot.slane %v1405_v24, 5  ;;  %v1427_v47 = vshll.u32 %v1405_v24, 16 }
 0x173   : > { %v2300_v28 = vshrl.u32 %v4294_v23, 16  ;;  %v4314_v35 = vld [vmem:[#allocation2 + $0x1c] sm:$0xf]  ;;  %v1440_v53 = vrot.slane %v1438_v44, 5  ;;  %v1443_v56 = vrot.slane %v612_v48, 4  ;;  %v1452_v24 = vrot.slane %v605_v5, 4 }
 0x174   : > { %v4305_v31 = vsel %vm4263_vm5, %v2286_v26, %v2287_v27  ;;  %v4311_v33 = vsel %vm4263_vm5, %v2279_v19, %v2280_v22  ;;  %v1429_v54 = vrot.slane %v1427_v47, 5  ;;  %v2291_v61 = vrot.slane %v4314_v35, 5 }
 0x175   : > { %v4307_v32 = vpack.i.b16 %v2300_v28, %v2299_v18  ;;  %v2310_v34 = vshrl.u32 %v4305_v31, 16  ;;  %v2309_v37 = vshrl.u32 %v4311_v33, 16  ;;  %v4342_v60 = vsel %vm4323_vm8, %v1437_v51, %v1440_v53  ;;  %v4351_v6 = vld [vmem:[#allocation2 + $0x20] sm:$0x1] }
 0x176   : > { %1141 = vrot.lane.b32.xlu1 %v4268_v1, %s3928_s10  ;;  %879 = vrot.lane.b32.xlu0 %v4314_v35, %s3927_s9  ;;  %v1475_v63 = vshrl.u32 %v4342_v60, 16  ;;  %v1444_v4 = vor.u32 %v1443_v56, %v1440_v53  ;;  %v4356_v10 = vsel %vm4323_vm8, %v1425_v62, %v1429_v54  ;;  %v2293_v16 = vrot.slane %v2291_v61, 4 }
 0x177   : > { %v2311_v46 = vpack.i.b16 %v2310_v34, %v2309_v37  ;;  %v2294_v17 = vrot.slane %v4351_v6, 5  ;;  %v1484_v19 = vshrl.u32 %v4356_v10, 16  ;;  %v1458_v28 = vshll.u32 %v4314_v35, 16 }
 0x178   : > { %v1476_v11 = vpack.i.b16 %v1475_v63, %v1474_v59  ;;  %v1445_v14 = vrot.slane %v1444_v4, 4  ;;  %v1456_v22 = vor.u32 %v1455_v25, %v1452_v24  ;;  %v3549_v37 = vrot.slane %v2265_v29, 9 }
 0x179   : > { %v4375_v27 = vsel %vm4263_vm5, %v2293_v16, %v2294_v17  ;;  %v1460_v34 = vrot.slane %v1458_v28, 5  ;;  %v4402_v47 = vrot.slane %v2311_v46, %v4174_v3  ;;  %v604_v46 = vpack.i.b16 %v5516_v0, %v4272_v8 }
 0x17a   : > { %875 = vrot.lane.b32.xlu1 %v4285_v13, %s3927_s9  ;;  %1143 = vrot.lane.b32.xlu0 %v4285_v13, %s3928_s10  ;;  %v4361_v18 = vsel %vm4323_vm8, %v1445_v14, %v1449_v15  ;;  %v2314_v30 = vshrl.u32 %v4375_v27, 16  ;;  %v1457_v38 = vrot.slane %v1456_v22, 4  ;;  %v4390_v41 = vsel %vm4263_vm5, %v3549_v37, %v2291_v61 }
 0x17b   : > { %v1485_v20 = vshrl.u32 %v4361_v18, 16  ;;  %v598_v54 = vpack.i.b16 %v4268_v1, %v4246_v52  ;;  %v633_v56 = vrot.slane %v604_v46, %v4174_v3  ;;  %v4426_v57 = vrot.slane %v1476_v11, %v4174_v3 }
 0x17c   : > { %v2315_v40 = vpack.i.b16 %v5516_v0, %v2314_v30  ;;  %v4394_v43 = vsel %vm4323_vm8, %v1457_v38, %v1460_v34  ;;  %v615_v14 = vpack.i.b16 %v5516_v0, %v4314_v35  ;;  %v616_v15 = vshrl.u32 %v4314_v35, 16 }
 0x17d   : > { %v4371_v26 = vpack.i.b16 %v1485_v20, %v1484_v19  ;;  %v1479_v44 = vshrl.u32 %v4394_v43, 16  ;;  %v625_v61 = vrot.slane %v598_v54, %v4174_v3  ;;  %v610_v16 = vpack.i.b16 %v4285_v13, %v4252_v55 }
 0x17e   : > { %1147 = vrot.lane.b32.xlu1 %v4314_v35, %s3928_s10  ;;  %2556 = vrot.lane.b32.xlu0 %v4294_v23, %s3927_s9  ;;  %v4405_v50 = vrot.slane %v2315_v40, %v4174_v3  ;;  %v701_v20 = vrot.slane %v615_v14, %v4174_v3  ;;  %v607_v35 = vpack.i.b16 %v5516_v0, %v605_v5  ;;  %v1463_v24 = vrot.slane %v616_v15, 4 }
 0x17f   : > { %v1480_v53 = vpack.i.b16 %v5516_v0, %v1479_v44  ;;  %v634_v4 = vcombine.low %v625_v61, %v633_v56  ;;  %v635_v11 = vcombine.high %v625_v61, %v633_v56  ;;  %v693_v25 = vrot.slane %v610_v16, %v4174_v3 }
 0x180   : > { %v2434_v2 = vcombine.low %v4402_v47, %v4405_v50  ;;  %v2435_v51 = vcombine.high %v4402_v47, %v4405_v50  ;;  %v601_v28 = vpack.i.b16 %v600_v12, %v599_v58  ;;  %v667_v30 = vrot.slane %v607_v35, %v4174_v3 }
 0x181   : > { %v4429_v59 = vrot.slane %v1480_v53, %v4174_v3  ;;  %v4445_v7 = vrot.slane %v634_v4, %v4165_v45  ;;  %v649_v19 = vrot.slane %v635_v11, %v4165_v45  ;;  %v702_v29 = vcombine.low %v693_v25, %v701_v20 }
 0x182   : > { %2552 = vrot.lane.b32.xlu1 %v4276_v9, %s3927_s9  ;;  %2822 = vrot.lane.b32.xlu0 %v4311_v33, %s3928_s10  ;;  %v1464_v8 = vor.u32 %v1463_v24, %v1460_v34  ;;  %v659_v5 = vrot.slane %v601_v28, %v4174_v3  ;;  %v1467_v37 = vshll.u32 %v4351_v6, 16  ;;  %v617_v58 = vpack.i.b16 %v5516_v0, %v616_v15 }
 0x183   : > { %v1542_v62 = vcombine.high %v4426_v57, %v4429_v59  ;;  %v1541_v63 = vcombine.low %v4426_v57, %v4429_v59  ;;  %v3602_v17 = vcombine.high %v4445_v7, %v4445_v7  ;;  %v3466_v22 = vcombine.low %v649_v19, %v649_v19 }
 0x184   : > { %v3604_v38 = vcombine.high %v649_v19, %v649_v19  ;;  %v4478_v52 = vrot.slane %v702_v29, %v4165_v45  ;;  %v668_v1 = vcombine.low %v659_v5, %v667_v30  ;;  %v1465_v12 = vrot.slane %v1464_v8, 4 }
 0x185   : > { %v613_v34 = vpack.i.b16 %v612_v48, %v611_v21  ;;  %v1469_v40 = vrot.slane %v1467_v37, 5  ;;  %v669_v53 = vcombine.high %v659_v5, %v667_v30  ;;  %v735_v46 = vrot.slane %v617_v58, %v4174_v3 }
 0x186   : > { %2820 = vrot.lane.b32.xlu1 %v4276_v9, %s3928_s10  ;;  %2824 = vrot.lane.b32.xlu0 %v4294_v23, %s3928_s10  ;;  %v3606_v6 = vcombine.high %v4478_v52, %v4478_v52  ;;  %v676_v44 = vrot.slane %v668_v1, %v4165_v45  ;;  %v703_v48 = vcombine.high %v693_v25, %v701_v20  ;;  %v2304_v16 = vshrl.u32 %v4390_v41, 16 }
 0x187   : > { %v4494_v54 = vsel %vm4323_vm8, %v1465_v12, %v1469_v40  ;;  %v727_v55 = vrot.slane %v613_v34, %v4174_v3  ;;  %v683_v21 = vrot.slane %v669_v53, %v4165_v45  ;;  %v2303_v42 = vpack.i.b16 %v5516_v0, %v4390_v41 }
 0x188   : > { %v3603_v13 = vcombine.high %v676_v44, %v676_v44  ;;  %v3463_v61 = vcombine.low %v676_v44, %v676_v44  ;;  %v717_v11 = vrot.slane %v703_v48, %v4165_v45  ;;  %v2298_v15 = vpack.i.b16 %v4294_v23, %v4276_v9 }
 0x189   : > { %v736_v56 = vcombine.low %v727_v55, %v735_v46  ;;  %v3467_v4 = vcombine.low %v683_v21, %v683_v21  ;;  %v737_v35 = vcombine.high %v727_v55, %v735_v46  ;;  %v2305_v25 = vpack.i.b16 %v5516_v0, %v2304_v16 }
 0x18a   : > { %2554 = vrot.lane.b32.xlu1 %v4311_v33, %s3927_s9  ;;  %1995 = vrot.lane.b32.xlu0 %v4331_v49, %s3928_s10  ;;  %v3473_v19 = vcombine.low %v717_v11, %v717_v11  ;;  %v2323_v24 = vrot.slane %v2298_v15, %v4174_v3  ;;  %v2313_v9 = vpack.i.b16 %v5516_v0, %v4375_v27  ;;  %v1489_v50 = vshrl.u32 %v4494_v54, 16 }
 0x18b   : > { %v744_v14 = vrot.slane %v736_v56, %v4165_v45  ;;  %v3608_v23 = vcombine.high %v717_v11, %v717_v11  ;;  %v2308_v29 = vpack.i.b16 %v4305_v31, %v4311_v33  ;;  %v3605_v8 = vcombine.high %v683_v21, %v683_v21 }
 0x18c   : > { %v2399_v30 = vrot.slane %v2313_v9, %v4174_v3  ;;  %v1478_v55 = vpack.i.b16 %v5516_v0, %v4394_v43  ;;  %v1483_v16 = vpack.i.b16 %v4361_v18, %v4356_v10  ;;  %vm3181_vm5 = vsmask.f32 4352 }
 0x18d   : > { %v3470_v20 = vcombine.low %v744_v14, %v744_v14  ;;  %v3607_v28 = vcombine.high %v744_v14, %v744_v14  ;;  %v2391_v1 = vrot.slane %v2308_v29, %v4174_v3  ;;  %vm5238_vm6 = vmand %vm3180_vm4, %vm3181_vm5  ;;  %vm3194_vm8 = vcmask 1047552  }
 0x18e   : > { %2558 = vrot.lane.b32.xlu0 %v4305_v31, %s3927_s9  ;;  %2560 = vrot.lane.b32.xlu1 %v4390_v41, %s3927_s9 }
 0x18f   : > { %v2400_v33 = vcombine.low %v2391_v1, %v2399_v30 }
 0x192   : > { %2830 = vrot.lane.b32.xlu0 %v4375_v27, %s3928_s10  ;;  %2828 = vrot.lane.b32.xlu1 %v4390_v41, %s3928_s10  ;;  %v751_v41 = vrot.slane %v737_v35, %v4165_v45  ;;  %v2442_v35 = vrot.slane %v2434_v2, %v4165_v45  ;;  %v2449_v2 = vrot.slane %v2435_v51, %v4165_v45 }
 0x194   : > { %v3474_v5 = vcombine.low %v751_v41, %v751_v41  ;;  %v3609_v12 = vcombine.high %v751_v41, %v751_v41 }
 0x196   : > { %1997 = vrot.lane.b32.xlu0 %v4356_v10, %s3928_s10  ;;  %2562 = vrot.lane.b32.xlu1 %v4375_v27, %s3927_s9 }
 0x19a   : > { %1727 = vrot.lane.b32.xlu1 %v4331_v49, %s3927_s9  ;;  %2003 = vrot.lane.b32.xlu0 %v4394_v43, %s3928_s10 }
 0x19e   : > { %2826 = vrot.lane.b32.xlu1 %v4305_v31, %s3928_s10  ;;  %1729 = vrot.lane.b32.xlu0 %v4356_v10, %s3927_s9  ;;  %v2357_v31 = vrot.slane %v4307_v32, %v4174_v3  ;;  %v2401_v32 = vcombine.high %v2391_v1, %v2399_v30 }
 0x1a0   : > { %v2415_v48 = vrot.slane %v2401_v32, %v4165_v45 }
 0x1a2   : > { %1999 = vrot.lane.b32.xlu1 %v4342_v60, %s3928_s10  ;;  %1731 = vrot.lane.b32.xlu0 %v4342_v60, %s3927_s9  ;;  %v3560_v11 = vcombine.low %v2415_v48, %v2415_v48 }
 0x1a6   : > { %1735 = vrot.lane.b32.xlu1 %v4394_v43, %s3927_s9  ;;  %762 = vrot.lane.b32.xlu0 %v3602_v17, %s3921_s30  ;;  %v2331_v17 = vrot.slane %v2303_v42, %v4174_v3  ;;  %v1473_v42 = vpack.i.b16 %v4342_v60, %v4331_v49 }
 0x1a8   : > { %v2333_v27 = vcombine.high %v2323_v24, %v2331_v17  ;;  %v1498_v15 = vrot.slane %v1473_v42, %v4174_v3 }
 0x1aa   : > { %2001 = vrot.lane.b32.xlu1 %v4361_v18, %s3928_s10  ;;  %772 = vrot.lane.b32.xlu0 %v3466_v22, %s3919_s18  ;;  %v2332_v22 = vcombine.low %v2323_v24, %v2331_v17  ;;  %v2347_v34 = vrot.slane %v2333_v27, %v4165_v45  ;;  %v1566_v24 = vrot.slane %v1483_v16, %v4174_v3 }
 0x1ac   : > { %v4527_v37 = vrot.slane %v2332_v22, %v4165_v45  ;;  %v3652_v44 = vcombine.high %v2347_v34, %v2347_v34  ;;  %v3553_v53 = vcombine.low %v2347_v34, %v2347_v34 }
 0x1ae   : > { %1733 = vrot.lane.b32.xlu1 %v4361_v18, %s3927_s9  ;;  %782 = vrot.lane.b32.xlu0 %v3604_v38, %s3920_s27  ;;  %5555 = vst [vmem:[#allocation16_spill] sm:$0xff] %v4527_v37  ;;  %v2365_v38 = vrot.slane %v2305_v25, %v4174_v3  ;;  %v3650_v58 = vcombine.high %v4527_v37, %v4527_v37 }
 0x1b0   : > { %v2366_v40 = vcombine.low %v2357_v31, %v2365_v38  ;;  %v2367_v56 = vcombine.high %v2357_v31, %v2365_v38 }
 0x1b2   : > { %2005 = vrot.lane.b32.xlu0 %v4494_v54, %s3928_s10  ;;  %797 = vrot.lane.b32.xlu1 %v3606_v6, %s3921_s30  ;;  %v4541_v6 = vrot.slane %v2400_v33, %v4165_v45  ;;  %v2374_v46 = vrot.slane %v2366_v40, %v4165_v45  ;;  %v2381_v14 = vrot.slane %v2367_v56, %v4165_v45 }
 0x1b4   : > { %v3654_v21 = vcombine.high %v4541_v6, %v4541_v6  ;;  %v3651_v43 = vcombine.high %v2374_v46, %v2374_v46  ;;  %v3653_v10 = vcombine.high %v2381_v14, %v2381_v14 }
 0x1b6   : > { %1737 = vrot.lane.b32.xlu0 %v4494_v54, %s3927_s9  ;;  %767 = vrot.lane.b32.xlu1 %v3603_v13, %s3922_s4  ;;  %v3550_v13 = vcombine.low %v2374_v46, %v2374_v46  ;;  %v1600_v46 = vrot.slane %v4371_v26, %v4174_v3 }
 0x1ba   : > { %757 = vrot.lane.b32.xlu0 %v3463_v61, %s3923_s7  ;;  %777 = vrot.lane.b32.xlu1 %v3467_v4, %s3917_s20  ;;  %v1506_v61 = vrot.slane %v1478_v55, %v4174_v3  ;;  %v1488_v4 = vpack.i.b16 %v5516_v0, %v4494_v54 }
 0x1bc   : > { %v1507_v49 = vcombine.low %v1498_v15, %v1506_v61  ;;  %v1574_v60 = vrot.slane %v1488_v4, %v4174_v3  ;;  %v1549_v4 = vrot.slane %v1541_v63, %v4165_v45 }
 0x1be   : > { %807 = vrot.lane.b32.xlu0 %v3473_v19, %s3919_s18  ;;  %792 = vrot.lane.b32.xlu1 %v3470_v20, %s3923_s7  ;;  %v3656_v19 = vcombine.high %v2415_v48, %v2415_v48  ;;  %v3554_v20 = vcombine.low %v2381_v14, %v2381_v14  ;;  %v4575_v18 = vrot.slane %v1507_v49, %v4165_v45 }
 0x1bf   : > { %v1575_v41 = vcombine.low %v1566_v24, %v1574_v60  ;;  %v1576_v22 = vcombine.high %v1566_v24, %v1574_v60  ;;  %v3505_v60 = vcombine.low %v1549_v4, %v1549_v4 }
 0x1c1   : > { %v4595_v47 = vrot.slane %v1575_v41, %v4165_v45  ;;  %v4607_v33 = vrot.slane %v1576_v22, %v4165_v45 }
 0x1c2   : > { %817 = vrot.lane.b32.xlu0 %v3608_v23, %s3920_s27  ;;  %802 = vrot.lane.b32.xlu1 %v3607_v28, %s3922_s4  ;;  %v3655_v23 = vcombine.high %v2442_v35, %v2442_v35  ;;  %v1508_v28 = vcombine.high %v1498_v15, %v1506_v61  ;;  %v3561_v61 = vcombine.low %v2449_v2, %v2449_v2 }
 0x1c3   : > { %v3630_v31 = vcombine.high %v4595_v47, %v4595_v47  ;;  %v3515_v40 = vcombine.low %v4607_v33, %v4607_v33 }
 0x1c4   : > { %v1522_v27 = vrot.slane %v1508_v28, %v4165_v45 }
 0x1c6   : > { %787 = vrot.lane.b32.xlu0 %v3605_v8, %s3918_s22  ;;  %812 = vrot.lane.b32.xlu1 %v3474_v5, %s3917_s20  ;;  %v3626_v8 = vcombine.high %v4575_v18, %v4575_v18  ;;  %v3657_v5 = vcombine.high %v2449_v2, %v2449_v2  ;;  %v3508_v1 = vcombine.low %v1522_v27, %v1522_v27 }
 0x1c7   : > { %v3628_v34 = vcombine.high %v1522_v27, %v1522_v27 }
 0x1ca   : > { %2460 = vrot.lane.b32.xlu0 %v3650_v58, %s3921_s30  ;;  %822 = vrot.lane.b32.xlu1 %v3609_v12, %s3918_s22  ;;  %v1490_v58 = vpack.i.b16 %v5516_v0, %v1489_v50 }
 0x1ce   : > { %2480 = vrot.lane.b32.xlu0 %v3652_v44, %s3920_s27  ;;  %2470 = vrot.lane.b32.xlu1 %v3553_v53, %s3919_s18  ;;  %v1556_v44 = vrot.slane %v1542_v62, %v4165_v45  ;;  %v1608_v53 = vrot.slane %v1490_v58, %v4174_v3 }
 0x1d0   : > { %v1609_v48 = vcombine.low %v1600_v46, %v1608_v53 }
 0x1d2   : > { %2455 = vrot.lane.b32.xlu0 %v3550_v13, %s3923_s7  ;;  %2495 = vrot.lane.b32.xlu1 %v3654_v21, %s3921_s30  ;;  %v3557_v13 = vcombine.low %v2442_v35, %v2442_v35  ;;  %v3509_v21 = vcombine.low %v1556_v44, %v1556_v44 }
 0x1d6   : > { %2465 = vrot.lane.b32.xlu0 %v3651_v43, %s3922_s4  ;;  %2505 = vrot.lane.b32.xlu1 %v3560_v11, %s3919_s18  ;;  %v3629_v43 = vcombine.high %v1556_v44, %v1556_v44  ;;  %v1617_v11 = vrot.slane %v1609_v48, %v4165_v45 }
 0x1d8   : > { %v4565_v17 = vpop.permute.xlu0 %1137  ;;  %v4577_v25 = vpop.permute.xlu1 %869  ;;  %v3631_v28 = vcombine.high %v1617_v11, %v1617_v11 }
 0x1d9   : > { %v884_v22 = vshrl.u32 %v4577_v25, 16 }
 0x1da   : > { %2515 = vrot.lane.b32.xlu0 %v3656_v19, %s3920_s27  ;;  %2475 = vrot.lane.b32.xlu1 %v3554_v20, %s3917_s20  ;;  %v3512_v19 = vcombine.low %v1617_v11, %v1617_v11  ;;  %v1610_v20 = vcombine.high %v1600_v46, %v1608_v53  ;;  %v1152_v11 = vshrl.u32 %v4565_v17, 16 }
 0x1dc   : > { %v4579_v9 = vpop.permute.xlu0 %871  ;;  %v1624_v41 = vrot.slane %v1610_v20, %v4165_v45 }
 0x1de   : > { %2485 = vrot.lane.b32.xlu0 %v3653_v10, %s3918_s22  ;;  %2500 = vrot.lane.b32.xlu1 %v3655_v23, %s3922_s4  ;;  %v3627_v23 = vcombine.high %v1549_v4, %v1549_v4  ;;  %v3633_v4 = vcombine.high %v1624_v41, %v1624_v41 }
 0x1e0   : > { %v4587_v29 = vpop.permute.xlu1 %877  ;;  %v4589_v30 = vpop.permute.xlu0 %873 }
 0x1e1   : > { %v888_v62 = vpack.i.b16 %v5516_v0, %v4587_v29  ;;  %v883_v56 = vpack.i.b16 %v4589_v30, %v4577_v25  ;;  %v889_v57 = vshrl.u32 %v4587_v29, 16  ;;  %v885_v59 = vshrl.u32 %v4589_v30, 16 }
 0x1e2   : > { %1635 = vrot.lane.b32.xlu0 %v3626_v8, %s3921_s30  ;;  %2520 = vrot.lane.b32.xlu1 %v3657_v5, %s3918_s22  ;;  %v3632_v25 = vcombine.high %v4607_v33, %v4607_v33 }
 0x1e3   : > { %v916_v14 = vrot.slane %v888_v62, %v4174_v3  ;;  %v908_v15 = vrot.slane %v883_v56, %v4174_v3  ;;  %v890_v30 = vpack.i.b16 %v5516_v0, %v889_v57  ;;  %v886_v5 = vpack.i.b16 %v885_v59, %v884_v22 }
 0x1e4   : > { %v4600_v51 = vpop.permute.xlu1 %1139  ;;  %v4602_v38 = vpop.permute.xlu0 %1145 }
 0x1e5   : > { %v918_v63 = vcombine.high %v908_v15, %v916_v14  ;;  %v1156_v8 = vpack.i.b16 %v5516_v0, %v4602_v38  ;;  %v917_v58 = vcombine.low %v908_v15, %v916_v14  ;;  %v950_v53 = vrot.slane %v890_v30, %v4174_v3 }
 0x1e6   : > { %1645 = vrot.lane.b32.xlu0 %v3508_v1, %s3919_s18  ;;  %1670 = vrot.lane.b32.xlu1 %v3630_v31, %s3921_s30  ;;  %v1157_v14 = vshrl.u32 %v4602_v38, 16 }
 0x1e7   : > { %v932_v31 = vrot.slane %v918_v63, %v4165_v45  ;;  %v1184_v46 = vrot.slane %v1156_v8, %v4174_v3 }
 0x1e8   : > { %v4612_v54 = vpop.permute.xlu1 %1141  ;;  %v4614_v12 = vpop.permute.xlu0 %879  ;;  %v1158_v63 = vpack.i.b16 %v5516_v0, %v1157_v14 }
 0x1e9   : > { %v1151_v2 = vpack.i.b16 %v4612_v54, %v4565_v17  ;;  %v898_v29 = vpack.i.b16 %v5516_v0, %v4614_v12  ;;  %v1153_v33 = vshrl.u32 %v4612_v54, 16  ;;  %v3480_v56 = vcombine.low %v932_v31, %v932_v31 }
 0x1ea   : > { %1655 = vrot.lane.b32.xlu0 %v3628_v34, %s3920_s27  ;;  %1680 = vrot.lane.b32.xlu1 %v3515_v40, %s3919_s18  ;;  %v3516_v40 = vcombine.low %v1624_v41, %v1624_v41  ;;  %v3612_v20 = vcombine.high %v932_v31, %v932_v31  ;;  %v1218_v8 = vrot.slane %v1158_v63, %v4174_v3 }
 0x1eb   : > { %v1176_v34 = vrot.slane %v1151_v2, %v4174_v3  ;;  %v984_v44 = vrot.slane %v898_v29, %v4174_v3  ;;  %v1154_v15 = vpack.i.b16 %v1153_v33, %v1152_v11 }
 0x1ec   : > { %v4627_v32 = vpop.permute.xlu1 %875  ;;  %v4629_v55 = vpop.permute.xlu0 %1143 }
 0x1ed   : > { %v893_v35 = vpack.i.b16 %v4627_v32, %v4579_v9  ;;  %v1186_v59 = vcombine.high %v1176_v34, %v1184_v46 }
 0x1ee   : > { %2490 = vrot.lane.b32.xlu0 %v3557_v13, %s3923_s7  ;;  %1650 = vrot.lane.b32.xlu1 %v3509_v21, %s3917_s20  ;;  %v942_v13 = vrot.slane %v886_v5, %v4174_v3 }
 0x1ef   : > { %v976_v27 = vrot.slane %v893_v35, %v4174_v3  ;;  %v1210_v35 = vrot.slane %v1154_v15, %v4174_v3  ;;  %v1200_v30 = vrot.slane %v1186_v59, %v4165_v45  ;;  %v894_v59 = vshrl.u32 %v4579_v9, 16 }
 0x1f0   : > { %v4637_v42 = vpop.permute.xlu1 %1147  ;;  %v4639_v26 = vpop.permute.xlu0 %2556  ;;  %v951_v54 = vcombine.low %v942_v13, %v950_v53 }
 0x1f1   : > { %v985_v21 = vcombine.low %v976_v27, %v984_v44  ;;  %v1219_v5 = vcombine.low %v1210_v35, %v1218_v8 }
 0x1f2   : > { %2510 = vrot.lane.b32.xlu0 %v3561_v61, %s3917_s20  ;;  %1660 = vrot.lane.b32.xlu1 %v3629_v43, %s3918_s22  ;;  %v1185_v61 = vcombine.low %v1176_v34, %v1184_v46  ;;  %v4696_v43 = vrot.slane %v917_v58, %v4165_v45  ;;  %v959_v22 = vrot.slane %v951_v54, %v4165_v45 }
 0x1f3   : > { %v4707_v57 = vrot.slane %v985_v21, %v4165_v45  ;;  %v3494_v34 = vcombine.low %v1200_v30, %v1200_v30  ;;  %v1227_v21 = vrot.slane %v1219_v5, %v4165_v45 }
 0x1f4   : > { %v4650_v16 = vpop.permute.xlu1 %2552  ;;  %v4652_v49 = vpop.permute.xlu0 %2822  ;;  %v3610_v17 = vcombine.high %v4696_v43, %v4696_v43  ;;  %v4712_v38 = vrot.slane %v1185_v61, %v4165_v45  ;;  %v3611_v31 = vcombine.high %v959_v22, %v959_v22  ;;  %v3620_v61 = vcombine.high %v1200_v30, %v1200_v30 }
 0x1f5   : > { %v3614_v41 = vcombine.high %v4707_v57, %v4707_v57  ;;  %v3491_v14 = vcombine.low %v1227_v21, %v1227_v21 }
 0x1f6   : > { %1630 = vrot.lane.b32.xlu0 %v3505_v60, %s3923_s7  ;;  %1665 = vrot.lane.b32.xlu1 %v3512_v19, %s3923_s7  ;;  %v3618_v29 = vcombine.high %v4712_v38, %v4712_v38 }
 0x1f8   : > { %v4660_v24 = vpop.permute.xlu1 %2820  ;;  %v4662_v10 = vpop.permute.xlu0 %2824 }
 0x1fa   : > { %1640 = vrot.lane.b32.xlu0 %v3627_v23, %s3922_s4  ;;  %1675 = vrot.lane.b32.xlu1 %v3631_v28, %s3922_s4  ;;  %v986_v23 = vcombine.high %v976_v27, %v984_v44 }
 0x1fc   : > { %v4676_v50 = vpop.permute.xlu1 %2554  ;;  %v4678_v1 = vpop.permute.xlu0 %1995  ;;  %v1000_v58 = vrot.slane %v986_v23, %v4165_v45 }
 0x1fe   : > { %1690 = vrot.lane.b32.xlu0 %v3632_v25, %s3920_s27  ;;  %1685 = vrot.lane.b32.xlu1 %v3516_v40, %s3917_s20  ;;  %v952_v40 = vcombine.high %v942_v13, %v950_v53  ;;  %v3616_v33 = vcombine.high %v1000_v58, %v1000_v58  ;;  %v895_v53 = vshrl.u32 %v4627_v32, 16  ;;  %v1220_v32 = vcombine.high %v1210_v35, %v1218_v8 }
 0x1ff   : > { %v3619_v8 = vcombine.high %v1227_v21, %v1227_v21 }
 0x200   : > { %v4691_v48 = vpop.permute.xlu1 %2560  ;;  %v4693_v62 = vpop.permute.xlu0 %2558  ;;  %v966_v54 = vrot.slane %v952_v40, %v4165_v45  ;;  %v896_v23 = vpack.i.b16 %v895_v53, %v894_v59  ;;  %v1234_v40 = vrot.slane %v1220_v32, %v4165_v45 }
 0x202   : > { %1055 = vrot.lane.b32.xlu0 %v3480_v56, %s3919_s18  ;;  %1695 = vrot.lane.b32.xlu1 %v3633_v4, %s3918_s22  ;;  %v1166_v56 = vpack.i.b16 %v5516_v0, %v4637_v42  ;;  %v1161_v4 = vpack.i.b16 %v4629_v55, %v4600_v51  ;;  %v3613_v30 = vcombine.high %v966_v54, %v966_v54 }
 0x203   : > { %v1010_v9 = vrot.slane %v896_v23, %v4174_v3  ;;  %v3621_v32 = vcombine.high %v1234_v40, %v1234_v40 }
 0x204   : > { %v4702_v60 = vpop.permute.xlu1 %2828  ;;  %v4704_v19 = vpop.permute.xlu0 %2830  ;;  %v1252_v15 = vrot.slane %v1166_v56, %v4174_v3  ;;  %v1244_v63 = vrot.slane %v1161_v4, %v4174_v3  ;;  %v3481_v56 = vcombine.low %v966_v54, %v966_v54  ;;  %v1163_v4 = vshrl.u32 %v4629_v55, 16 }
 0x205   : > { %v3495_v54 = vcombine.low %v1234_v40, %v1234_v40  ;;  %v2839_v39 = vpack.i.b16 %v5516_v0, %v4702_v60  ;;  %v2840_v37 = vshrl.u32 %v4702_v60, 16  ;;  %v2834_v60 = vpack.i.b16 %v4662_v10, %v4660_v24 }
 0x206   : > { %1065 = vrot.lane.b32.xlu0 %v3612_v20, %s3920_s27  ;;  %1045 = vrot.lane.b32.xlu1 %v3610_v17, %s3921_s30  ;;  %v3477_v20 = vcombine.low %v959_v22, %v959_v22  ;;  %v899_v17 = vshrl.u32 %v4614_v12, 16  ;;  %v1253_v5 = vcombine.low %v1244_v63, %v1252_v15  ;;  %v1167_v12 = vshrl.u32 %v4637_v42, 16 }
 0x207   : > { %v1162_v42 = vshrl.u32 %v4600_v51, 16 }
 0x208   : > { %v4718_v2 = vpop.permute.xlu1 %2562  ;;  %v4720_v28 = vpop.permute.xlu0 %1997  ;;  %v900_v22 = vpack.i.b16 %v5516_v0, %v899_v17  ;;  %v1168_v21 = vpack.i.b16 %v5516_v0, %v1167_v12 }
 0x209   : > { %v1164_v55 = vpack.i.b16 %v1163_v4, %v1162_v42  ;;  %v2581_v40 = vpack.i.b16 %v5516_v0, %v4718_v2  ;;  %v2576_v42 = vpack.i.b16 %v4693_v62, %v4676_v50 }
 0x20a   : > { %1080 = vrot.lane.b32.xlu0 %v3614_v41, %s3921_s30  ;;  %1313 = vrot.lane.b32.xlu1 %v3618_v29, %s3921_s30  ;;  %v1286_v51 = vrot.slane %v1168_v21, %v4174_v3  ;;  %v2571_v21 = vpack.i.b16 %v5516_v0, %v4691_v48 }
 0x20c   : > { %v4731_v27 = vpop.permute.xlu1 %1727  ;;  %v4733_v25 = vpop.permute.xlu0 %2003 }
 0x20e   : > { %1050 = vrot.lane.b32.xlu0 %v3611_v31, %s3922_s4  ;;  %1323 = vrot.lane.b32.xlu1 %v3494_v34, %s3919_s18  ;;  %v3487_v31 = vcombine.low %v1000_v58, %v1000_v58  ;;  %v4776_v58 = vrot.slane %v1253_v5, %v4165_v45 }
 0x210   : > { %v4738_v44 = vpop.permute.xlu1 %2826  ;;  %v4740_v46 = vpop.permute.xlu0 %1729 }
 0x212   : > { %1100 = vrot.lane.b32.xlu0 %v3616_v33, %s3920_s27  ;;  %1333 = vrot.lane.b32.xlu1 %v3620_v61, %s3920_s27  ;;  %v1254_v33 = vcombine.high %v1244_v63, %v1252_v15  ;;  %v1018_v61 = vrot.slane %v900_v22, %v4174_v3 }
 0x214   : > { %v4750_v13 = vpop.permute.xlu1 %1999  ;;  %v4752_v11 = vpop.permute.xlu0 %1731  ;;  %v1019_v53 = vcombine.low %v1010_v9, %v1018_v61  ;;  %v1268_v59 = vrot.slane %v1254_v33, %v4165_v45 }
 0x216   : > { %1308 = vrot.lane.b32.xlu0 %v3491_v14, %s3923_s7  ;;  %1040 = vrot.lane.b32.xlu1 %v3477_v20, %s3923_s7  ;;  %v3622_v20 = vcombine.high %v4776_v58, %v4776_v58  ;;  %v1027_v23 = vrot.slane %v1019_v53, %v4165_v45  ;;  %v3501_v5 = vcombine.low %v1268_v59, %v1268_v59 }
 0x217   : > { %v3624_v4 = vcombine.high %v1268_v59, %v1268_v59 }
 0x218   : > { %v4761_v41 = vpop.permute.xlu1 %1735  ;;  %v4763_v29 = vpop.permute.xlu0 %762  ;;  %v3484_v33 = vcombine.low %v1027_v23, %v1027_v23  ;;  %v3615_v59 = vcombine.high %v1027_v23, %v1027_v23  ;;  %v2599_v23 = vrot.slane %v2571_v21, %v4174_v3 }
 0x21a   : > { %1070 = vrot.lane.b32.xlu0 %v3613_v30, %s3918_s22  ;;  %1090 = vrot.lane.b32.xlu1 %v3487_v31, %s3919_s18  ;;  %v1020_v30 = vcombine.high %v1010_v9, %v1018_v61  ;;  %v1278_v31 = vrot.slane %v1164_v55, %v4174_v3  ;;  %v2567_v61 = vshrl.u32 %v4650_v16, 16 }
 0x21c   : > { %v4770_v34 = vpop.permute.xlu1 %2001  ;;  %v4772_v35 = vpop.permute.xlu0 %772  ;;  %v1287_v22 = vcombine.low %v1278_v31, %v1286_v51  ;;  %v1034_v9 = vrot.slane %v1020_v30, %v4165_v45  ;;  %v1288_v53 = vcombine.high %v1278_v31, %v1286_v51  ;;  %v2566_v51 = vpack.i.b16 %v4639_v26, %v4650_v16 }
 0x21d   : > { %v2659_v31 = vrot.slane %v2576_v42, %v4174_v3 }
 0x21e   : > { %1318 = vrot.lane.b32.xlu0 %v3619_v8, %s3922_s4  ;;  %1060 = vrot.lane.b32.xlu1 %v3481_v56, %s3917_s20  ;;  %v2572_v56 = vshrl.u32 %v4691_v48, 16  ;;  %v1295_v55 = vrot.slane %v1287_v22, %v4165_v45 }
 0x220   : > { %v4784_v14 = vpop.permute.xlu1 %1733  ;;  %v4786_v15 = vpop.permute.xlu0 %782  ;;  %v2573_v30 = vpack.i.b16 %v5516_v0, %v2572_v56  ;;  %v3623_v56 = vcombine.high %v1295_v55, %v1295_v55  ;;  %v3498_v16 = vcombine.low %v1295_v55, %v1295_v55  ;;  %v2844_v55 = vpack.i.b16 %v4738_v44, %v4652_v49 }
 0x222   : > { %1328 = vrot.lane.b32.xlu0 %v3495_v54, %s3917_s20  ;;  %1348 = vrot.lane.b32.xlu1 %v3622_v20, %s3921_s30  ;;  %v4837_v36 = vrot.slane %v2573_v30, %v4174_v3 }
 0x224   : > { %v4794_v17 = vpop.permute.xlu1 %797  ;;  %v4796_v63 = vpop.permute.xlu0 %2005 }
 0x225   : > { %5556 = vst [vmem:[#allocation17_spill] sm:$0xff] %v4794_v17 }
 0x226   : > { %1338 = vrot.lane.b32.xlu0 %v3621_v32, %s3918_s22  ;;  %1358 = vrot.lane.b32.xlu1 %v3501_v5, %s3919_s18  ;;  %v2568_v32 = vshrl.u32 %v4639_v26, 16  ;;  %v2667_v5 = vrot.slane %v2581_v40, %v4174_v3  ;;  %v1302_v40 = vrot.slane %v1288_v53, %v4165_v45 }
 0x228   : > { %v4802_v12 = vpop.permute.xlu1 %767  ;;  %v4804_v8 = vpop.permute.xlu0 %1737  ;;  %v2569_v48 = vpack.i.b16 %v2568_v32, %v2567_v61  ;;  %v2668_v26 = vcombine.low %v2659_v31, %v2667_v5  ;;  %v2591_v61 = vrot.slane %v2566_v51, %v4174_v3  ;;  %v3502_v53 = vcombine.low %v1302_v40, %v1302_v40 }
 0x22a   : > { %1075 = vrot.lane.b32.xlu0 %v3484_v33, %s3923_s7  ;;  %1368 = vrot.lane.b32.xlu1 %v3624_v4, %s3920_s27  ;;  %v3488_v33 = vcombine.low %v1034_v9, %v1034_v9  ;;  %v4842_v42 = vrot.slane %v2569_v48, %v4174_v3  ;;  %v2600_v21 = vcombine.low %v2591_v61, %v2599_v23 }
 0x22b   : > { %v4854_v51 = vrot.slane %v2668_v26, %v4165_v45  ;;  %v2849_v48 = vpack.i.b16 %v5516_v0, %v4704_v19 }
 0x22c   : > { %v4817_v54 = vpop.permute.xlu1 %777  ;;  %v4819_v20 = vpop.permute.xlu0 %757  ;;  %v2634_v30 = vcombine.low %v4842_v42, %v4837_v36  ;;  %v4868_v26 = vrot.slane %v2600_v21, %v4165_v45  ;;  %v2836_v21 = vshrl.u32 %v4662_v10, 16 }
 0x22d   : > { %5560 = vst [vmem:[#allocation21_spill] sm:$0xff] %v4854_v51 }
 0x22e   : > { %1085 = vrot.lane.b32.xlu0 %v3615_v59, %s3922_s4  ;;  %1095 = vrot.lane.b32.xlu1 %v3488_v33, %s3917_s20  ;;  %v3617_v33 = vcombine.high %v1034_v9, %v1034_v9  ;;  %5562 = vst [vmem:[#allocation23_spill] sm:$0xff] %v4868_v26 }
 0x230   : > { %v4831_v22 = vpop.permute.xlu1 %792  ;;  %v4833_v4 = vpop.permute.xlu0 %807 }
 0x231   : > { %5557 = vst [vmem:[#allocation18_spill] sm:$0xff] %v4833_v4  ;;  %v4871_v4 = vrot.slane %v2844_v55, %v4174_v3 }
 0x232   : > { %1353 = vrot.lane.b32.xlu0 %v3623_v56, %s3922_s4  ;;  %1343 = vrot.lane.b32.xlu1 %v3498_v16, %s3923_s7  ;;  %v3625_v56 = vcombine.high %v1302_v40, %v1302_v40  ;;  %v2601_v16 = vcombine.high %v2591_v61, %v2599_v23  ;;  %v3662_v40 = vcombine.high %v4854_v51, %v4854_v51  ;;  %v2835_v61 = vshrl.u32 %v4660_v24, 16 }
 0x233   : > { %v4876_v23 = vrot.slane %v2634_v30, %v4165_v45  ;;  %v2841_v24 = vpack.i.b16 %v5516_v0, %v2840_v37 }
 0x234   : > { %v4845_v59 = vpop.permute.xlu1 %802  ;;  %v4847_v32 = vpop.permute.xlu0 %817 }
 0x235   : > { %5558 = vst [vmem:[#allocation19_spill] sm:$0xff] %v4845_v59  ;;  %5559 = vst [vmem:[#allocation20_spill] sm:$0xff] %v4847_v32 }
 0x236   : > { %1363 = vrot.lane.b32.xlu0 %v3502_v53, %s3917_s20  ;;  %1105 = vrot.lane.b32.xlu1 %v3617_v33, %s3918_s22  ;;  %v2669_v53 = vcombine.high %v2659_v31, %v2667_v5  ;;  %v4884_v5 = vrot.slane %v2849_v48, %v4174_v3  ;;  %v2867_v31 = vrot.slane %v2839_v39, %v4174_v3 }
 0x237   : > { %v3658_v33 = vcombine.high %v4868_v26, %v4868_v26  ;;  %v3659_v48 = vcombine.high %v4876_v23, %v4876_v23  ;;  %v2859_v39 = vrot.slane %v2834_v60, %v4174_v3 }
 0x238   : > { %v4863_v32 = vpop.permute.xlu1 %812  ;;  %v4865_v9 = vpop.permute.xlu0 %787  ;;  %v2936_v10 = vcombine.low %v4871_v4, %v4884_v5 }
 0x239   : > { %5561 = vst [vmem:[#allocation22_spill] sm:$0xff] %v4863_v32  ;;  %v2868_v37 = vcombine.low %v2859_v39, %v2867_v31 }
 0x23a   : > { %1373 = vrot.lane.b32.xlu0 %v3625_v56, %s3918_s22  ;;  %2763 = vrot.lane.b32.xlu1 %v3662_v40, %s3921_s30  ;;  %v2615_v56 = vrot.slane %v2601_v16, %v4165_v45  ;;  %v4901_v40 = vrot.slane %v2669_v53, %v4165_v45  ;;  %v2635_v16 = vcombine.high %v4842_v42, %v4837_v36  ;;  %v2582_v53 = vshrl.u32 %v4718_v2, 16 }
 0x23b   : > { %v2578_v42 = vshrl.u32 %v4693_v62, 16 }
 0x23c   : > { %v4888_v55 = vpop.permute.xlu1 %822  ;;  %v4890_v30 = vpop.permute.xlu0 %2460  ;;  %v3567_v26 = vcombine.low %v2615_v56, %v2615_v56  ;;  %v3664_v60 = vcombine.high %v4901_v40, %v4901_v40  ;;  %v2649_v62 = vrot.slane %v2635_v16, %v4165_v45 }
 0x23d   : > { %5563 = vst [vmem:[#allocation24_spill] sm:$0xff] %v4888_v55  ;;  %5564 = vst [vmem:[#allocation25_spill] sm:$0xff] %v4890_v30  ;;  %v2837_v30 = vpack.i.b16 %v2836_v21, %v2835_v61  ;;  %v2901_v55 = vrot.slane %v2841_v24, %v4174_v3  ;;  %v4917_v61 = vrot.slane %v2936_v10, %v4165_v45  ;;  %v2577_v21 = vshrl.u32 %v4676_v50, 16 }
 0x23e   : > { %2728 = vrot.lane.b32.xlu0 %v3658_v33, %s3921_s30  ;;  %2733 = vrot.lane.b32.xlu1 %v3659_v48, %s3922_s4  ;;  %v2869_v33 = vcombine.high %v2859_v39, %v2867_v31  ;;  %v3660_v48 = vcombine.high %v2615_v56, %v2615_v56 }
 0x23f   : > { %5567 = vst [vmem:[#allocation28_spill] sm:$0xff] %v4917_v61  ;;  %v2893_v36 = vrot.slane %v2837_v30, %v4174_v3  ;;  %v3670_v30 = vcombine.high %v4917_v61, %v4917_v61  ;;  %v2579_v50 = vpack.i.b16 %v2578_v42, %v2577_v21 }
 0x240   : > { %v4908_v0 = vpop.permute.xlu1 %2470  ;;  %v4910_v51 = vpop.permute.xlu0 %2480 }
 0x241   : > { %5565 = vst [vmem:[#allocation26_spill] sm:$0xff] %v4908_v0  ;;  %5566 = vst [vmem:[#allocation27_spill] sm:$0xff] %v4910_v51  ;;  %v4929_v51 = vrot.slane %v2868_v37, %v4165_v45  ;;  %v2902_v10 = vcombine.low %v2893_v36, %v2901_v55  ;;  %v5570_v0 = vmov 0   ;;  %v4944_v37 = vrot.slane %v2869_v33, %v4165_v45 }
 0x242   : > { %2738 = vrot.lane.b32.xlu0 %v3567_v26, %s3919_s18  ;;  %2783 = vrot.lane.b32.xlu1 %v3664_v60, %s3920_s27  ;;  %v2583_v26 = vpack.i.b16 %v5570_v0, %v2582_v53  ;;  %v2903_v53 = vcombine.high %v2893_v36, %v2901_v55  ;;  %v2693_v42 = vrot.slane %v2579_v50, %v4174_v3 }
 0x243   : > { %5569 = vst [vmem:[#allocation30_spill] sm:$0xff] %v4929_v51  ;;  %v3666_v56 = vcombine.high %v4929_v51, %v4929_v51  ;;  %v2910_v16 = vrot.slane %v2902_v10, %v4165_v45  ;;  %v3581_v33 = vcombine.low %v4944_v37, %v4944_v37  ;;  %v1746_v55 = vpack.i.b16 %v5570_v0, %v4761_v41 }
 0x244   : > { %v4924_v24 = vpop.permute.xlu1 %2495  ;;  %v4926_v2 = vpop.permute.xlu0 %2455  ;;  %v2701_v60 = vrot.slane %v2583_v26, %v4174_v3  ;;  %v4960_v10 = vrot.slane %v2903_v53, %v4165_v45 }
 0x245   : > { %5568 = vst [vmem:[#allocation29_spill] sm:$0xff] %v4926_v2  ;;  %v3661_v2 = vcombine.high %v2649_v62, %v2649_v62  ;;  %v3667_v36 = vcombine.high %v2910_v16, %v2910_v16 }
 0x246   : > { %2748 = vrot.lane.b32.xlu0 %v3660_v48, %s3920_s27  ;;  %3031 = vrot.lane.b32.xlu1 %v3670_v30, %s3921_s30  ;;  %v2702_v30 = vcombine.low %v2693_v42, %v2701_v60  ;;  %5574 = vst [vmem:[#allocation34_spill] sm:$0xff] %v4960_v10  ;;  %v2703_v26 = vcombine.high %v2693_v42, %v2701_v60  ;;  %v2845_v60 = vshrl.u32 %v4652_v49, 16  ;;  %v2850_v42 = vshrl.u32 %v4704_v19, 16 }
 0x247   : > { %v3582_v53 = vcombine.low %v4960_v10, %v4960_v10 }
 0x248   : > { %v4937_v31 = vpop.permute.xlu1 %2505  ;;  %v4939_v39 = vpop.permute.xlu0 %2465  ;;  %v2717_v19 = vrot.slane %v2703_v26, %v4165_v45 }
 0x249   : > { %5571 = vst [vmem:[#allocation31_spill] sm:$0xff] %v4939_v39  ;;  %v4972_v39 = vrot.slane %v1746_v55, %v4174_v3  ;;  %v3574_v55 = vcombine.low %v4901_v40, %v4901_v40 }
 0x24a   : > { %2996 = vrot.lane.b32.xlu0 %v3666_v56, %s3921_s30  ;;  %2753 = vrot.lane.b32.xlu1 %v3661_v2, %s3918_s22  ;;  %v1741_v2 = vpack.i.b16 %v4752_v11, %v4731_v27  ;;  %v3665_v32 = vcombine.high %v2717_v19, %v2717_v19 }
 0x24c   : > { %v4951_v21 = vpop.permute.xlu1 %2475  ;;  %v4953_v48 = vpop.permute.xlu0 %2515 }
 0x24d   : > { %5572 = vst [vmem:[#allocation32_spill] sm:$0xff] %v4951_v21  ;;  %5573 = vst [vmem:[#allocation33_spill] sm:$0xff] %v4953_v48  ;;  %v3564_v48 = vcombine.low %v4876_v23, %v4876_v23  ;;  %v2846_v21 = vshrl.u32 %v4738_v44, 16 }
 0x24e   : > { %3006 = vrot.lane.b32.xlu0 %v3581_v33, %s3919_s18  ;;  %3001 = vrot.lane.b32.xlu1 %v3667_v36, %s3922_s4  ;;  %v4977_v33 = vrot.slane %v2702_v30, %v4165_v45  ;;  %v4983_v36 = vrot.slane %v1741_v2, %v4174_v3  ;;  %v2851_v2 = vpack.i.b16 %v5570_v0, %v2850_v42 }
 0x24f   : > { %v2847_v30 = vpack.i.b16 %v2846_v21, %v2845_v60  ;;  %v3568_v21 = vcombine.low %v2649_v62, %v2649_v62  ;;  %v2009_v42 = vpack.i.b16 %v4750_v13, %v4678_v1 }
 0x250   : > { %v2501_v50 = vpop.permute.xlu1 %2500  ;;  %v4966_v56 = vpop.permute.xlu0 %2485  ;;  %v3663_v49 = vcombine.high %v4977_v33, %v4977_v33  ;;  %v2969_v26 = vrot.slane %v2851_v2, %v4174_v3 }
 0x251   : > { %5575 = vst [vmem:[#allocation35_spill] sm:$0xff] %v4966_v56  ;;  %v2961_v60 = vrot.slane %v2847_v30, %v4174_v3  ;;  %v3575_v56 = vcombine.low %v2717_v19, %v2717_v19 }
 0x252   : > { %2723 = vrot.lane.b32.xlu0 %v3564_v48, %s3923_s7  ;;  %3011 = vrot.lane.b32.xlu1 %v3582_v53, %s3917_s20  ;;  %v1776_v48 = vcombine.high %v4983_v36, %v4972_v39  ;;  %v2937_v53 = vcombine.high %v4871_v4, %v4884_v5 }
 0x253   : > { %v2970_v30 = vcombine.low %v2961_v60, %v2969_v26  ;;  %v2971_v19 = vcombine.high %v2961_v60, %v2969_v26 }
 0x254   : > { %v4986_v44 = vpop.permute.xlu1 %2520  ;;  %v4988_v23 = vpop.permute.xlu0 %1635  ;;  %v1790_v61 = vrot.slane %v1776_v48, %v4165_v45  ;;  %v2951_v62 = vrot.slane %v2937_v53, %v4165_v45  ;;  %v2014_v48 = vpack.i.b16 %v5570_v0, %v4733_v25 }
 0x255   : > { %5576 = vst [vmem:[#allocation36_spill] sm:$0xff] %v4986_v44  ;;  %v5030_v10 = vrot.slane %v2970_v30, %v4165_v45  ;;  %v5054_v26 = vrot.slane %v2971_v19, %v4165_v45  ;;  %v1751_v19 = vpack.i.b16 %v4784_v14, %v4740_v46 }
 0x256   : > { %2773 = vrot.lane.b32.xlu0 %v3574_v55, %s3919_s18  ;;  %2768 = vrot.lane.b32.xlu1 %v3663_v49, %s3922_s4  ;;  %v3578_v55 = vcombine.low %v2910_v16, %v2910_v16  ;;  %v3522_v49 = vcombine.low %v1790_v61, %v1790_v61  ;;  %v3588_v51 = vcombine.low %v2951_v62, %v2951_v62 }
 0x257   : > { %v2024_v16 = vpack.i.b16 %v5570_v0, %v4796_v63  ;;  %v3672_v59 = vcombine.high %v2951_v62, %v2951_v62  ;;  %v3671_v17 = vcombine.high %v5030_v10, %v5030_v10 }
 0x258   : > { %v5002_v44 = vpop.permute.xlu1 %1670  ;;  %v5004_v40 = vpop.permute.xlu0 %1645 }
 0x25a   : > { %2743 = vrot.lane.b32.xlu0 %v3568_v21, %s3917_s20  ;;  %2778 = vrot.lane.b32.xlu1 %v3575_v56, %s3917_s20  ;;  %v2034_v56 = vrot.slane %v2009_v42, %v4174_v3 }
 0x25c   : > { %v5013_v4 = vpop.permute.xlu1 %1680  ;;  %v5015_v5 = vpop.permute.xlu0 %1655 }
 0x25e   : > { %2991 = vrot.lane.b32.xlu0 %v3578_v55, %s3923_s7  ;;  %1913 = vrot.lane.b32.xlu1 %v3522_v49, %s3919_s18  ;;  %v2042_v55 = vrot.slane %v2014_v48, %v4174_v3  ;;  %v2019_v49 = vpack.i.b16 %v4770_v34, %v4720_v28 }
 0x260   : > { %v5023_v2 = vpop.permute.xlu1 %1650  ;;  %v2491_v21 = vpop.permute.xlu0 %2490  ;;  %v2043_v30 = vcombine.low %v2034_v56, %v2042_v55 }
 0x261   : > { %v2539_v53 = vsel %vm824_vm9, %v4541_v6, %v2491_v21 }
 0x262   : > { %v2541_v42 = vsel %vm828_vm10, %v2539_v53, %v4924_v24  ;;  %3041 = vrot.lane.b32.xlu0 %v3588_v51, %s3919_s18  ;;  %2788 = vrot.lane.b32.xlu1 %v3665_v32, %s3918_s22  ;;  %v2110_v24 = vrot.slane %v2024_v16, %v4174_v3  ;;  %v2044_v32 = vcombine.high %v2034_v56, %v2042_v55 }
 0x263   : > { %v2543_v6 = vsel %vm831_vm11, %v2541_v42, %v2501_v50  ;;  %v2102_v50 = vrot.slane %v2019_v49, %v4174_v3  ;;  %v5057_v62 = vrot.slane %v2043_v30, %v4165_v45  ;;  %v1756_v42 = vpack.i.b16 %v5570_v0, %v4804_v8 }
 0x264   : > { %v2545_v48 = vsel %vm834_vm12, %v2543_v6, %v4937_v31  ;;  %v2511_v21 = vpop.permute.xlu0 %2510  ;;  %v1661_v53 = vpop.permute.xlu1 %1660  ;;  %v3571_v31 = vcombine.low %v4977_v33, %v4977_v33  ;;  %v3636_v55 = vcombine.high %v1790_v61, %v1790_v61  ;;  %v2011_v49 = vshrl.u32 %v4750_v13, 16 }
 0x265   : > { %v5044_v51 = vsel %vm837_vm13, %v2545_v48, %v2511_v21  ;;  %v2111_v16 = vcombine.low %v2102_v50, %v2110_v24  ;;  %v1775_v6 = vcombine.low %v4983_v36, %v4972_v39  ;;  %v2112_v61 = vcombine.high %v2102_v50, %v2110_v24 }
 0x266   : > { %3051 = vrot.lane.b32.xlu0 %v3672_v59, %s3920_s27  ;;  %3036 = vrot.lane.b32.xlu1 %v3671_v17, %s3922_s4  ;;  %v2010_v17 = vshrl.u32 %v4678_v1, 16  ;;  %v3642_v13 = vcombine.high %v5057_v62, %v5057_v62  ;;  %v1842_v39 = vrot.slane %v1756_v42, %v4174_v3 }
 0x267   : > { %v5085_v24 = vrot.slane %v2111_v16, %v4165_v45 }
 0x268   : > { %v1631_v60 = vpop.permute.xlu0 %1630  ;;  %v1666_v59 = vpop.permute.xlu1 %1665 }
 0x269   : > { %v1699_v56 = vsel %vm824_vm9, %v4575_v18, %v1631_v60  ;;  %v1714_v33 = vsel %vm824_vm9, %v4595_v47, %v1666_v59  ;;  %v2058_v18 = vrot.slane %v2044_v32, %v4165_v45  ;;  %v3589_v47 = vcombine.low %v5054_v26, %v5054_v26 }
 0x26a   : > { %2758 = vrot.lane.b32.xlu0 %v3571_v31, %s3923_s7  ;;  %1923 = vrot.lane.b32.xlu1 %v3636_v55, %s3920_s27  ;;  %v1701_v1 = vsel %vm828_vm10, %v1699_v56, %v4988_v23  ;;  %v1716_v36 = vsel %vm828_vm10, %v1714_v33, %v5002_v44  ;;  %v2015_v23 = vshrl.u32 %v4733_v25, 16  ;;  %v2012_v60 = vpack.i.b16 %v2011_v49, %v2010_v17 }
 0x26b   : > { %v1834_v31 = vrot.slane %v1751_v19, %v4174_v3  ;;  %v3536_v42 = vcombine.low %v2058_v18, %v2058_v18  ;;  %v2126_v59 = vrot.slane %v2112_v61, %v4165_v45  ;;  %v3646_v33 = vcombine.high %v5085_v24, %v5085_v24 }
 0x26c   : > { %v1641_v30 = vpop.permute.xlu0 %1640  ;;  %v1676_v48 = vpop.permute.xlu1 %1675  ;;  %v1747_v19 = vshrl.u32 %v4761_v41, 16  ;;  %v1742_v41 = vshrl.u32 %v4731_v27, 16  ;;  %v3585_v27 = vcombine.low %v5030_v10, %v5030_v10  ;;  %v2020_v10 = vshrl.u32 %v4720_v28, 16 }
 0x26d   : > { %v1703_v21 = vsel %vm831_vm11, %v1701_v1, %v1641_v30  ;;  %v1718_v32 = vsel %vm831_vm11, %v1716_v36, %v1676_v48  ;;  %v1843_v56 = vcombine.low %v1834_v31, %v1842_v39  ;;  %v3543_v30 = vcombine.low %v2126_v59, %v2126_v59 }
 0x26e   : > { %v1705_v50 = vsel %vm834_vm12, %v1703_v21, %v5004_v40  ;;  %2171 = vrot.lane.b32.xlu0 %v3642_v13, %s3921_s30  ;;  %3046 = vrot.lane.b32.xlu1 %v3589_v47, %s3917_s20  ;;  %v5100_v40 = vrot.slane %v1775_v6, %v4165_v45  ;;  %v1720_v17 = vsel %vm834_vm12, %v1718_v32, %v5013_v4  ;;  %v1743_v36 = vshrl.u32 %v4752_v11, 16 }
 0x26f   : > { %v1707_v44 = vsel %vm837_vm13, %v1705_v50, %v5023_v2  ;;  %v5121_v47 = vrot.slane %v1843_v56, %v4165_v45  ;;  %v3644_v50 = vcombine.high %v2058_v18, %v2058_v18  ;;  %v1752_v28 = vshrl.u32 %v4740_v46, 16 }
 0x270   : > { %v1709_v25 = vsel %vm840_vm14, %v1707_v44, %v5015_v5  ;;  %v1691_v16 = vpop.permute.xlu0 %1690  ;;  %v1686_v2 = vpop.permute.xlu1 %1685  ;;  %v2016_v5 = vpack.i.b16 %v5570_v0, %v2015_v23  ;;  %v3634_v4 = vcombine.high %v5100_v40, %v5100_v40  ;;  %v1748_v23 = vpack.i.b16 %v5570_v0, %v1747_v19 }
 0x271   : > { %v5103_v55 = vsel %vm843_vm15, %v1709_v25, %v1661_v53  ;;  %v1722_v49 = vsel %vm837_vm13, %v1720_v17, %v1686_v2  ;;  %v2068_v53 = vrot.slane %v2012_v60, %v4174_v3  ;;  %v1844_v60 = vcombine.high %v1834_v31, %v1842_v39 }
 0x272   : > { %2181 = vrot.lane.b32.xlu0 %v3536_v42, %s3919_s18  ;;  %v1724_v6 = vsel %vm840_vm14, %v1722_v49, %v1691_v16  ;;  %2206 = vrot.lane.b32.xlu1 %v3646_v33, %s3921_s30  ;;  %v2076_v13 = vrot.slane %v2016_v5, %v4174_v3  ;;  %v3638_v11 = vcombine.high %v5121_v47, %v5121_v47  ;;  %v2025_v39 = vshrl.u32 %v4796_v63, 16 }
 0x273   : > { %v1744_v25 = vpack.i.b16 %v1743_v36, %v1742_v41  ;;  %v1808_v16 = vrot.slane %v1748_v23, %v4174_v3  ;;  %v3648_v17 = vcombine.high %v2126_v59, %v2126_v59  ;;  %v5146_v2 = vrot.slane %v1844_v60, %v4165_v45 }
 0x274   : > { %v5116_v61 = vpop.permute.xlu0 %1055  ;;  %v1696_v1 = vpop.permute.xlu1 %1695  ;;  %v2077_v21 = vcombine.low %v2068_v53, %v2076_v13  ;;  %v2078_v18 = vcombine.high %v2068_v53, %v2076_v13  ;;  %v2021_v5 = vshrl.u32 %v4770_v34, 16  ;;  %v2026_v63 = vpack.i.b16 %v5570_v0, %v2025_v39 }
 0x275   : > { %v5126_v48 = vsel %vm843_vm15, %v1724_v6, %v1696_v1  ;;  %v1800_v33 = vrot.slane %v1744_v25, %v4174_v3  ;;  %v1757_v59 = vshrl.u32 %v4804_v8, 16  ;;  %v3529_v1 = vcombine.low %v5146_v2, %v5146_v2 }
 0x276   : > { %1903 = vrot.lane.b32.xlu0 %v3634_v4, %s3921_s30  ;;  %2216 = vrot.lane.b32.xlu1 %v3543_v30, %s3919_s18  ;;  %v2085_v56 = vrot.slane %v2077_v21, %v4165_v45  ;;  %v2092_v30 = vrot.slane %v2078_v18, %v4165_v45  ;;  %v2022_v34 = vpack.i.b16 %v2021_v5, %v2020_v10  ;;  %v1753_v13 = vshrl.u32 %v4784_v14, 16 }
 0x277   : > { %v1809_v49 = vcombine.low %v1800_v33, %v1808_v16  ;;  %v1810_v6 = vcombine.high %v1800_v33, %v1808_v16  ;;  %v2144_v21 = vrot.slane %v2026_v63, %v4174_v3  ;;  %v1758_v23 = vpack.i.b16 %v5570_v0, %v1757_v59 }
 0x278   : > { %v5132_v32 = vpop.permute.xlu0 %1065  ;;  %v1046_v44 = vpop.permute.xlu1 %1045  ;;  %v3533_v19 = vcombine.low %v2085_v56, %v2085_v56  ;;  %v3643_v41 = vcombine.high %v2085_v56, %v2085_v56  ;;  %v3645_v60 = vcombine.high %v2092_v30, %v2092_v30  ;;  %v2136_v14 = vrot.slane %v2022_v34, %v4174_v3 }
 0x279   : > { %v1817_v8 = vrot.slane %v1809_v49, %v4165_v45  ;;  %v1754_v25 = vpack.i.b16 %v1753_v13, %v1752_v28  ;;  %v1876_v56 = vrot.slane %v1758_v23, %v4174_v3  ;;  %v3108_v23 = vshrl.u32 %v5103_v55, 16 }
 0x27a   : > { %2191 = vrot.lane.b32.xlu0 %v3644_v50, %s3920_s27  ;;  %1938 = vrot.lane.b32.xlu1 %v3638_v11, %s3921_s30  ;;  %v1824_v11 = vrot.slane %v1810_v6, %v4165_v45 }
 0x27b   : > { %v3519_v16 = vcombine.low %v1817_v8, %v1817_v8  ;;  %v1868_v10 = vrot.slane %v1754_v25, %v4174_v3 }
 0x27c   : > { %v5139_v42 = vpop.permute.xlu0 %1080  ;;  %v1314_v31 = vpop.permute.xlu1 %1313  ;;  %v3523_v39 = vcombine.low %v1824_v11, %v1824_v11 }
 0x27d   : > { %v1877_v59 = vcombine.low %v1868_v10, %v1876_v56 }
 0x27e   : > { %3026 = vrot.lane.b32.xlu0 %v3585_v27, %s3923_s7  ;;  %2226 = vrot.lane.b32.xlu1 %v3648_v17, %s3920_s27  ;;  %v2145_v27 = vcombine.low %v2136_v14, %v2144_v21  ;;  %v827_v17 = vsel %vm824_vm9, %v4445_v7, %v4819_v20 }
 0x27f   : > { %v830_v7 = vsel %vm828_vm10, %v827_v17, %v4763_v29  ;;  %v1885_v13 = vrot.slane %v1877_v59, %v4165_v45 }
 0x280   : > { %v1051_v53 = vpop.permute.xlu0 %1050  ;;  %v1324_v4 = vpop.permute.xlu1 %1323  ;;  %v2153_v3 = vrot.slane %v2145_v27, %v4165_v45 }
 0x282   : > { %2166 = vrot.lane.b32.xlu0 %v3533_v19, %s3923_s7  ;;  %1948 = vrot.lane.b32.xlu1 %v3529_v1, %s3919_s18  ;;  %v3537_v19 = vcombine.low %v2092_v30, %v2092_v30  ;;  %v3635_v1 = vcombine.high %v1817_v8, %v1817_v8  ;;  %v3647_v34 = vcombine.high %v2153_v3, %v2153_v3  ;;  %s3930_s18 = smov [#allocation8]  }
 0x284   : > { %v5162_v36 = vpop.permute.xlu0 %1100  ;;  %v5167_v50 = vpop.permute.xlu1 %1333 }
 0x286   : > { %2176 = vrot.lane.b32.xlu0 %v3643_v41, %s3922_s4  ;;  %2196 = vrot.lane.b32.xlu1 %v3645_v60, %s3918_s22  ;;  %v1878_v41 = vcombine.high %v1868_v10, %v1876_v56  ;;  %v3111_v60 = vshll.u32 %v5103_v55, 16 }
 0x288   : > { %v1309_v46 = vpop.permute.xlu0 %1308  ;;  %v1041_v18 = vpop.permute.xlu1 %1040 }
 0x289   : > { %v1377_v0 = vsel %vm824_vm9, %v4712_v38, %v1309_v46  ;;  %v1109_v33 = vsel %vm824_vm9, %v4696_v43, %v1041_v18  ;;  %v3637_v38 = vcombine.high %v1824_v11, %v1824_v11 }
 0x28a   : > { %1898 = vrot.lane.b32.xlu0 %v3519_v16, %s3923_s7  ;;  %v1379_v5 = vsel %vm828_vm10, %v1377_v0, %v1314_v31  ;;  %v1111_v49 = vsel %vm828_vm10, %v1109_v33, %v1046_v44  ;;  %1918 = vrot.lane.b32.xlu1 %v3523_v39, %s3917_s20  ;;  %v2146_v44 = vcombine.high %v2136_v14, %v2144_v21  ;;  %v3113_v33 = vrot.slane %v3111_v60, 4 }
 0x28b   : > { %v1113_v63 = vsel %vm831_vm11, %v1111_v49, %v1051_v53  ;;  %v833_v31 = vsel %vm831_vm11, %v830_v7, %v4802_v12  ;;  %v3640_v14 = vcombine.high %v5146_v2, %v5146_v2  ;;  %v3540_v0 = vcombine.low %v2153_v3, %v2153_v3 }
 0x28c   : > { %v1071_v6 = vpop.permute.xlu0 %1070  ;;  %v5189_v43 = vpop.permute.xlu1 %1090  ;;  %v1115_v20 = vsel %vm834_vm12, %v1113_v63, %v5116_v61  ;;  %v836_v12 = vsel %vm834_vm12, %v833_v31, %v4772_v35  ;;  %v2160_v21 = vrot.slane %v2146_v44, %v4165_v45  ;;  %v1892_v2 = vrot.slane %v1878_v41, %v4165_v45 }
 0x28d   : > { %v839_v27 = vsel %vm837_vm13, %v836_v12, %v4817_v54  ;;  %v3110_v54 = vrot.slane %v3108_v23, 3  ;;  %v3639_v44 = vcombine.high %v1885_v13, %v1885_v13  ;;  %v3673_v41 = vcombine.high %v5054_v26, %v5054_v26  ;;  %v5581_v23 = vld [vmem:[#allocation17_spill] sm:$0xff] }
 0x28e   : > { %2186 = vrot.lane.b32.xlu0 %v3537_v19, %s3917_s20  ;;  %1928 = vrot.lane.b32.xlu1 %v3637_v38, %s3918_s22  ;;  %v3530_v7 = vcombine.low %v1892_v2, %v1892_v2 }
 0x290   : > { %v1319_v53 = vpop.permute.xlu0 %1318  ;;  %v1061_v30 = vpop.permute.xlu1 %1060 }
 0x291   : > { %v1381_v29 = vsel %vm831_vm11, %v1379_v5, %v1319_v53  ;;  %v1117_v61 = vsel %vm837_vm13, %v1115_v20, %v1061_v30  ;;  %v3114_v20 = vor.u32 %v3113_v33, %v3110_v54  ;;  %v3641_v30 = vcombine.high %v1892_v2, %v1892_v2 }
 0x292   : > { %1908 = vrot.lane.b32.xlu0 %v3635_v1, %s3922_s4  ;;  %v1383_v28 = vsel %vm834_vm12, %v1381_v29, %v1324_v4  ;;  %v1119_v8 = vsel %vm840_vm14, %v1117_v61, %v5132_v32  ;;  %2211 = vrot.lane.b32.xlu1 %v3647_v34, %s3922_s4  ;;  %v3526_v32 = vcombine.low %v1885_v13, %v1885_v13 }
 0x293   : > { %v1121_v11 = vsel %vm843_vm15, %v1119_v8, %v1071_v6  ;;  %v3544_v6 = vcombine.low %v2160_v21, %v2160_v21  ;;  %v3649_v61 = vcombine.high %v2160_v21, %v2160_v21  ;;  %v849_v13 = vsel %vm824_vm9, %v4478_v52, %v4831_v22  ;;  %v5582_v22 = vld [vmem:[#allocation19_spill] sm:$0xff] }
 0x294   : > { %v1329_v4 = vpop.permute.xlu0 %1328  ;;  %v3088_v25 = vshrl.u32 %v1121_v11, 16  ;;  %v3091_v46 = vshll.u32 %v1121_v11, 16  ;;  %v1349_v35 = vpop.permute.xlu1 %1348  ;;  %v851_v60 = vsel %vm828_vm10, %v849_v13, %v5581_v23 }
 0x295   : > { %v1385_v16 = vsel %vm837_vm13, %v1383_v28, %v1329_v4  ;;  %v853_v26 = vsel %vm831_vm11, %v851_v60, %v5582_v22  ;;  %v3118_v4 = vshll.u32 %v5126_v48, 16 }
 0x296   : > { %1958 = vrot.lane.b32.xlu0 %v3640_v14, %s3920_s27  ;;  %v1387_v55 = vsel %vm840_vm14, %v1385_v16, %v5167_v50  ;;  %v3090_v56 = vrot.slane %v3088_v25, 6  ;;  %v3093_v18 = vrot.slane %v3091_v46, 7  ;;  %1933 = vrot.lane.b32.xlu1 %v3526_v32, %s3923_s7  ;;  %v842_v50 = vsel %vm840_vm14, %v839_v27, %v4786_v15  ;;  %v5583_v25 = vld [vmem:[#allocation34_spill] sm:$0xff] }
 0x297   : > { %v845_v45 = vsel %vm843_vm15, %v842_v50, %v4865_v9  ;;  %v3669_v46 = vcombine.high %v5583_v25, %v5583_v25  ;;  %v5584_v32 = vld [vmem:[#allocation18_spill] sm:$0xff]  ;;  %v3120_v54 = vrot.slane %v3118_v4, 4 }
 0x298   : > { %v1339_v17 = vpop.permute.xlu0 %1338  ;;  %v3094_v5 = vor.u32 %v3093_v18, %v3090_v56  ;;  %v1359_v10 = vpop.permute.xlu1 %1358  ;;  %v855_v27 = vsel %vm834_vm12, %v853_v26, %v5584_v32 }
 0x299   : > { %v1389_v49 = vsel %vm843_vm15, %v1387_v55, %v1339_v17 }
 0x29a   : > { %v3106_v38 = vrot.slane %v1389_v49, 5  ;;  %2201 = vrot.lane.b32.xlu0 %v3540_v0, %s3923_s7  ;;  %v3169_v19 = vsel %vm5224_vm3, %v845_v45, %v3094_v5  ;;  %2221 = vrot.lane.b32.xlu1 %v3544_v6, %s3917_s20  ;;  %v5586_v6 = vld [vmem:[#allocation20_spill] sm:$0xff] }
 0x29c   : > { %v3174_v15 = vsel %vm2272_vm0, %v3169_v19, %v3106_v38  ;;  %v1076_v59 = vpop.permute.xlu0 %1075  ;;  %v1369_v3 = vpop.permute.xlu1 %1368  ;;  %v5587_v19 = vld [vmem:[#allocation24_spill] sm:$0xff] }
 0x29d   : > { %v1124_v9 = vsel %vm824_vm9, %v4707_v57, %v1076_v59  ;;  %v5250_v53 = vsel %vm5238_vm6, %v3174_v15, %v3114_v20 }
 0x29e   : > { %1953 = vrot.lane.b32.xlu0 %v3530_v7, %s3917_s20  ;;  %v1126_v31 = vsel %vm828_vm10, %v1124_v9, %v5139_v42  ;;  %1943 = vrot.lane.b32.xlu1 %v3639_v44, %s3922_s4  ;;  %s3307_s20 = scalar_lea.sflag [#allocation5], %s4093_s29 }
 0x2a0   : > { %v1086_v1 = vpop.permute.xlu0 %1085  ;;  %v1096_v29 = vpop.permute.xlu1 %1095 }
 0x2a1   : > { %v1128_v34 = vsel %vm831_vm11, %v1126_v31, %v1086_v1 }
 0x2a2   : > { %v1130_v57 = vsel %vm834_vm12, %v1128_v34, %v5189_v43  ;;  %1963 = vrot.lane.b32.xlu0 %v3641_v30, %s3918_s22  ;;  %2231 = vrot.lane.b32.xlu1 %v3649_v61, %s3918_s22  ;;  %v3668_v43 = vcombine.high %v4944_v37, %v4944_v37 }
 0x2a3   : > { %v1132_v42 = vsel %vm837_vm13, %v1130_v57, %v1096_v29 }
 0x2a4   : > { %v1354_v28 = vpop.permute.xlu0 %1353  ;;  %v1134_v12 = vsel %vm840_vm14, %v1132_v42, %v5162_v36  ;;  %v1344_v8 = vpop.permute.xlu1 %1343  ;;  %v3115_v36 = vshrl.u32 %v5126_v48, 16  ;;  %v5585_v48 = vld [vmem:[#allocation22_spill] sm:$0xff] }
 0x2a5   : > { %v1392_v21 = vsel %vm824_vm9, %v4776_v58, %v1344_v8  ;;  %v857_v0 = vsel %vm837_vm13, %v855_v27, %v5585_v48 }
 0x2a6   : > { %3056 = vrot.lane.b32.xlu0 %v3673_v41, %s3918_s22  ;;  %v1394_v52 = vsel %vm828_vm10, %v1392_v21, %v1349_v35  ;;  %3016 = vrot.lane.b32.xlu1 %v3668_v43, %s3920_s27  ;;  %v3117_v2 = vrot.slane %v3115_v36, 3  ;;  %v859_v45 = vsel %vm840_vm14, %v857_v0, %v5586_v6  ;;  %v5588_v41 = vld [vmem:[#allocation23_spill] sm:$0xff]  ;;  %s3814_s27 = sshll.u32 %s3930_s18, 4  ;;  %s3815_s27 = int_to_ptr.vmem [resolvable:$false] %s3814_s27 }
 0x2a7   : > { %v1396_v11 = vsel %vm831_vm11, %v1394_v52, %v1354_v28  ;;  %v861_v15 = vsel %vm843_vm15, %v859_v45, %v5587_v19  ;;  %s3816_s30 = scalar_lea.vmem %s3815_s27, 256  ;;  %p3817_p13 = scmp.lt.s32.totalorder %s3327_s6, %s3815_s27 }
 0x2a8   : > { %v1364_v37 = vpop.permute.xlu0 %1363  ;;  %v1106_v58 = vpop.permute.xlu1 %1105  ;;  %v1398_v14 = vsel %vm834_vm12, %v1396_v11, %v1359_v10  ;;  %v3121_v7 = vor.u32 %v3120_v54, %v3117_v2 }
 0x2a9   : > { %v1136_v35 = vsel %vm843_vm15, %v1134_v12, %v1106_v58  ;;  %v1400_v16 = vsel %vm837_vm13, %v1398_v14, %v1364_v37  ;;  %v5589_v37 = vld [vmem:[#allocation30_spill] sm:$0xff] }
 0x2aa   : > { %v3095_v55 = vshrl.u32 %v1136_v35, 16  ;;  %v3098_v56 = vshll.u32 %v1136_v35, 16  ;;  %3021 = vrot.lane.b32.xlu1 %v3669_v46, %s3918_s22  ;;  %v1402_v18 = vsel %vm840_vm14, %v1400_v16, %v1369_v3  ;;  %s3810_s22 = scalar_lea.vmem %s3327_s6, 128 }
 0x2ab   : > { %p3811_p6 = scmp.ne.s32.totalorder %s3327_s6, %s3810_s22  ;;  %p3818_p0 = scmp.lt.s32.totalorder %s3816_s30, %s3810_s22 }
 0x2ac   : > { %v1374_v17 = vpop.permute.xlu0 %1373  ;;  %v3097_v33 = vrot.slane %v3095_v55, 6  ;;  %v3100_v50 = vrot.slane %v3098_v56, 7  ;;  %v2764_v5 = vpop.permute.xlu1 %2763 }
 0x2ad   : > { %v1404_v10 = vsel %vm843_vm15, %v1402_v18, %v1374_v17  ;;  %v5590_v18 = vld [vmem:[#allocation21_spill] sm:$0xff]  ;;  %p3812_p9 = pnand %p3811_p6, %p4044_p8  ;;  %p3819_p5 = por %p3818_p0, %p3817_p13 }
 0x2ae   : > { %v3107_v49 = vrot.slane %v1404_v10, 5  ;;  %v3101_v38 = vor.u32 %v3100_v50, %v3097_v33 }
 0x2af   : > { %p3813_p12 = pneg %p3812_p9 }
 0x2b0   : > { %v2729_v59 = vpop.permute.xlu0 %2728  ;;  %v2734_v20 = vpop.permute.xlu1 %2733  ;;  %v3170_v3 = vsel %vm5224_vm3, %v861_v15, %v3101_v38 }
 0x2b1   : > { %v3178_v9 = vsel %vm2272_vm0, %v3170_v3, %v3107_v49  ;;  %p3820_p10 = pnand %p3819_p5, %p3813_p12 }
 0x2b2   : > { %v5301_v44 = vsel %vm5238_vm6, %v3178_v9, %v3121_v7 }
 0x2b4   : > { %v2739_v31 = vpop.permute.xlu0 %2738  ;;  %v2784_v1 = vpop.permute.xlu1 %2783 }
 0x2b8   : > { %v2749_v30 = vpop.permute.xlu0 %2748  ;;  %v3032_v29 = vpop.permute.xlu1 %3031 }
 0x2bc   : > { %v2997_v34 = vpop.permute.xlu0 %2996  ;;  %v2754_v61 = vpop.permute.xlu1 %2753 }
 0x2c0   : > { %v3007_v57 = vpop.permute.xlu0 %3006  ;;  %v3002_v42 = vpop.permute.xlu1 %3001 }
 0x2c4   : > { %v2724_v13 = vpop.permute.xlu0 %2723  ;;  %v3012_v28 = vpop.permute.xlu1 %3011 }
 0x2c5   : > { %v2792_v39 = vsel %vm824_vm9, %v5588_v41, %v2724_v13 }
 0x2c6   : > { %v2794_v12 = vsel %vm828_vm10, %v2792_v39, %v2729_v59 }
 0x2c7   : > { %v2796_v8 = vsel %vm831_vm11, %v2794_v12, %v2734_v20  ;;  %v5591_v20 = vld [vmem:[#allocation28_spill] sm:$0xff] }
 0x2c8   : > { %v2774_v63 = vpop.permute.xlu0 %2773  ;;  %v2798_v43 = vsel %vm834_vm12, %v2796_v8, %v2739_v31  ;;  %v2769_v21 = vpop.permute.xlu1 %2768 }
 0x2cc   : > { %v2744_v23 = vpop.permute.xlu0 %2743  ;;  %v2779_v60 = vpop.permute.xlu1 %2778 }
 0x2cd   : > { %v2800_v52 = vsel %vm837_vm13, %v2798_v43, %v2744_v23 }
 0x2ce   : > { %v2802_v22 = vsel %vm840_vm14, %v2800_v52, %v2749_v30 }
 0x2cf   : > { %v5311_v26 = vsel %vm843_vm15, %v2802_v22, %v2754_v61 }
 0x2d0   : > { %v2992_v36 = vpop.permute.xlu0 %2991  ;;  %v1914_v11 = vpop.permute.xlu1 %1913 }
 0x2d1   : > { %v3060_v4 = vsel %vm824_vm9, %v5589_v37, %v2992_v36  ;;  %v5592_v36 = vld [vmem:[#allocation29_spill] sm:$0xff]  ;;  %v5593_v37 = vld [vmem:[#allocation16_spill] sm:$0xff] }
 0x2d2   : > { %v3062_v58 = vsel %vm828_vm10, %v3060_v4, %v2997_v34 }
 0x2d3   : > { %v3064_v14 = vsel %vm831_vm11, %v3062_v58, %v3002_v42 }
 0x2d4   : > { %v3042_v25 = vpop.permute.xlu0 %3041  ;;  %v3066_v46 = vsel %vm834_vm12, %v3064_v14, %v3007_v57  ;;  %v2789_v35 = vpop.permute.xlu1 %2788 }
 0x2d5   : > { %v5319_v16 = vsel %vm837_vm13, %v3066_v46, %v3012_v28 }
 0x2d8   : > { %v3052_v32 = vpop.permute.xlu0 %3051  ;;  %v3037_v27 = vpop.permute.xlu1 %3036 }
 0x2dc   : > { %v2759_v55 = vpop.permute.xlu0 %2758  ;;  %v1924_v56 = vpop.permute.xlu1 %1923 }
 0x2dd   : > { %v2807_v48 = vsel %vm824_vm9, %v5590_v18, %v2759_v55  ;;  %v5595_v55 = vld [vmem:[#allocation31_spill] sm:$0xff] }
 0x2de   : > { %v2809_v0 = vsel %vm828_vm10, %v2807_v48, %v2764_v5 }
 0x2df   : > { %v2811_v2 = vsel %vm831_vm11, %v2809_v0, %v2769_v21 }
 0x2e0   : > { %v2813_v17 = vsel %vm834_vm12, %v2811_v2, %v2774_v63  ;;  %v2172_v54 = vpop.permute.xlu0 %2171  ;;  %v3047_v50 = vpop.permute.xlu1 %3046 }
 0x2e1   : > { %v2815_v33 = vsel %vm837_vm13, %v2813_v17, %v2779_v60 }
 0x2e2   : > { %v2817_v10 = vsel %vm840_vm14, %v2815_v33, %v2784_v1 }
 0x2e3   : > { %v5329_v49 = vsel %vm843_vm15, %v2817_v10, %v2789_v35 }
 0x2e4   : > { %v2182_v6 = vpop.permute.xlu0 %2181  ;;  %v2207_v45 = vpop.permute.xlu1 %2206 }
 0x2e8   : > { %v1904_v38 = vpop.permute.xlu0 %1903  ;;  %v2217_v19 = vpop.permute.xlu1 %2216 }
 0x2ec   : > { %v2192_v15 = vpop.permute.xlu0 %2191  ;;  %v1939_v59 = vpop.permute.xlu1 %1938 }
 0x2f0   : > { %v3027_v5 = vpop.permute.xlu0 %3026  ;;  %v5331_v7 = vpop.permute.xlu1 %2226 }
 0x2f1   : > { %v3075_v3 = vsel %vm824_vm9, %v5591_v20, %v3027_v5 }
 0x2f2   : > { %v3077_v9 = vsel %vm828_vm10, %v3075_v3, %v3032_v29 }
 0x2f3   : > { %v3079_v31 = vsel %vm831_vm11, %v3077_v9, %v3037_v27 }
 0x2f4   : > { %v2167_v1 = vpop.permute.xlu0 %2166  ;;  %v3081_v30 = vsel %vm834_vm12, %v3079_v31, %v3042_v25  ;;  %v1949_v34 = vpop.permute.xlu1 %1948  ;;  %v5598_v31 = vld [vmem:[#allocation27_spill] sm:$0xff] }
 0x2f5   : > { %v3083_v61 = vsel %vm837_vm13, %v3081_v30, %v3047_v50  ;;  %v2235_v39 = vsel %vm824_vm9, %v5057_v62, %v2167_v1  ;;  %v2524_v62 = vsel %vm824_vm9, %v5593_v37, %v5592_v36 }
 0x2f6   : > { %v5340_v57 = vsel %vm840_vm14, %v3083_v61, %v3052_v32  ;;  %v2237_v63 = vsel %vm828_vm10, %v2235_v39, %v2172_v54  ;;  %v5594_v32 = vld [vmem:[#allocation25_spill] sm:$0xff]  ;;  %v5596_v54 = vld [vmem:[#allocation26_spill] sm:$0xff]  ;;  %v3156_v39 = vshll.u32 %v5329_v49, 16 }
 0x2f8   : > { %v2177_v42 = vpop.permute.xlu0 %2176  ;;  %v2197_v13 = vpop.permute.xlu1 %2196  ;;  %v3158_v37 = vrot.slane %v3156_v39, 6 }
 0x2f9   : > { %v2239_v43 = vsel %vm831_vm11, %v2237_v63, %v2177_v42  ;;  %v5600_v42 = vld [vmem:[#allocation33_spill] sm:$0xff] }
 0x2fa   : > { %v2241_v4 = vsel %vm834_vm12, %v2239_v43, %v2182_v6 }
 0x2fc   : > { %v1899_v28 = vpop.permute.xlu0 %1898  ;;  %v1919_v41 = vpop.permute.xlu1 %1918 }
 0x2fd   : > { %v1967_v29 = vsel %vm824_vm9, %v5100_v40, %v1899_v28 }
 0x2fe   : > { %v1969_v21 = vsel %vm828_vm10, %v1967_v29, %v1904_v38  ;;  %v5597_v38 = vld [vmem:[#allocation32_spill] sm:$0xff] }
 0x300   : > { %v2187_v12 = vpop.permute.xlu0 %2186  ;;  %v1929_v8 = vpop.permute.xlu1 %1928 }
 0x301   : > { %v2243_v58 = vsel %vm837_vm13, %v2241_v4, %v2187_v12 }
 0x302   : > { %v2245_v48 = vsel %vm840_vm14, %v2243_v58, %v2192_v15 }
 0x303   : > { %v2247_v50 = vsel %vm843_vm15, %v2245_v48, %v2197_v13  ;;  %v2549_v13 = vsel %vm840_vm14, %v5044_v51, %v5600_v42  ;;  %v3146_v51 = vshrl.u32 %v5311_v26, 16 }
 0x304   : > { %v1909_v23 = vpop.permute.xlu0 %1908  ;;  %v2212_v60 = vpop.permute.xlu1 %2211  ;;  %v3128_v9 = vshll.u32 %v2247_v50, 16 }
 0x305   : > { %v1971_v52 = vsel %vm831_vm11, %v1969_v21, %v1909_v23  ;;  %v5601_v23 = vld [vmem:[#allocation36_spill] sm:$0xff] }
 0x306   : > { %v1973_v22 = vsel %vm834_vm12, %v1971_v52, %v1914_v11  ;;  %v2526_v11 = vsel %vm828_vm10, %v2524_v62, %v5594_v32  ;;  %v3130_v63 = vrot.slane %v3128_v9, 1  ;;  %v3134_v52 = vshrl.u32 %v2247_v50, 16 }
 0x307   : > { %v1975_v40 = vsel %vm837_vm13, %v1973_v22, %v1919_v41  ;;  %v2528_v18 = vsel %vm831_vm11, %v2526_v11, %v5595_v55  ;;  %v3153_v41 = vshrl.u32 %v5329_v49, 16  ;;  %v3929_v62 = vmov 65535  }
 0x308   : > { %v1977_v14 = vsel %vm840_vm14, %v1975_v40, %v1924_v56  ;;  %v1959_v25 = vpop.permute.xlu0 %1958  ;;  %v1934_v46 = vpop.permute.xlu1 %1933  ;;  %v2530_v33 = vsel %vm834_vm12, %v2528_v18, %v5596_v54  ;;  %v3225_v4 = vsel %vm3180_vm4, 4294967295, %v3929_v62 }
 0x309   : > { %v1979_v35 = vsel %vm843_vm15, %v1977_v14, %v1929_v8  ;;  %v1982_v10 = vsel %vm824_vm9, %v5121_v47, %v1934_v46  ;;  %v2532_v15 = vsel %vm837_vm13, %v2530_v33, %v5597_v38  ;;  %v3136_v46 = vor.u32 %v3134_v52, %v3130_v63 }
 0x30a   : > { %v3126_v27 = vrot.slane %v1979_v35, 2  ;;  %v2534_v1 = vsel %vm840_vm14, %v2532_v15, %v5598_v31  ;;  %v3148_v35 = vrot.slane %v3146_v51, 5 }
 0x30c   : > { %v2202_v0 = vpop.permute.xlu0 %2201  ;;  %v5366_v2 = vsel %vm3185_vm7, %v5250_v53, %v3126_v27  ;;  %v2222_v56 = vpop.permute.xlu1 %2221 }
 0x30d   : > { %v2250_v17 = vsel %vm824_vm9, %v5085_v24, %v2202_v0  ;;  %v1984_v24 = vsel %vm828_vm10, %v1982_v10, %v1939_v59  ;;  %vm3195_vm9 = vsmask.f32 7424 }
 0x30e   : > { %v2252_v6 = vsel %vm828_vm10, %v2250_v17, %v2207_v45  ;;  %v5599_v45 = vld [vmem:[#allocation35_spill] sm:$0xff]  ;;  %vm3199_vm10 = vcmask 1040384  }
 0x30f   : > { %v2254_v53 = vsel %vm831_vm11, %v2252_v6, %v2212_v60  ;;  %v2536_v61 = vsel %vm843_vm15, %v2534_v1, %v5599_v45  ;;  %v2551_v60 = vsel %vm843_vm15, %v2549_v13, %v5601_v23 }
 0x310   : > { %v1954_v5 = vpop.permute.xlu0 %1953  ;;  %v2256_v20 = vsel %vm834_vm12, %v2254_v53, %v2217_v19  ;;  %v1944_v3 = vpop.permute.xlu1 %1943  ;;  %v3144_v27 = vrot.slane %v2536_v61, 7  ;;  %v3145_v55 = vrot.slane %v2551_v60, 7 }
 0x311   : > { %v1986_v30 = vsel %vm831_vm11, %v1984_v24, %v1944_v3  ;;  %v2258_v47 = vsel %vm837_vm13, %v2256_v20, %v2222_v56  ;;  %vm5408_vm11 = vmand %vm3194_vm8, %vm3195_vm9  ;;  %v3226_v56 = vsel %vm3185_vm7, %v3225_v4, 0  ;;  %v3219_v24 = vld [vmem:[#allocation6] sm:$0xf] }
 0x312   : > { %v1988_v19 = vsel %vm834_vm12, %v1986_v30, %v1949_v34  ;;  %v2260_v29 = vsel %vm840_vm14, %v2258_v47, %v5331_v7  ;;  %v3149_v34 = vshll.u32 %v5311_v26, 16  ;;  %v3155_v7 = vrot.slane %v3153_v41, 5 }
 0x313   : > { %v1990_v59 = vsel %vm837_vm13, %v1988_v19, %v1954_v5  ;;  %vm3208_vm12 = vsmask.f32 2304  ;;  %vm3212_vm13 = vcmask 1043456   ;;  %v3202_v50 = vsel %vm3199_vm10, %v3136_v46, %v3144_v27 }
 0x314   : > { %v1964_v28 = vpop.permute.xlu0 %1963  ;;  %v2232_v12 = vpop.permute.xlu1 %2231  ;;  %v1992_v8 = vsel %vm840_vm14, %v1990_v59, %v1959_v25  ;;  %v3151_v32 = vrot.slane %v3149_v34, 6  ;;  %v3159_v0 = vor.u32 %v3158_v37, %v3155_v7  ;;  %vm3209_vm1 = vmand %vm2272_vm0, %vm3208_vm12 }
 0x315   : > { %v2262_v43 = vsel %vm843_vm15, %v2260_v29, %v2232_v12  ;;  %v1994_v21 = vsel %vm843_vm15, %v1992_v8, %v1964_v28 }
 0x316   : > { %v3131_v49 = vshll.u32 %v2262_v43, 16  ;;  %v3127_v22 = vrot.slane %v1994_v21, 2  ;;  %v3137_v58 = vshrl.u32 %v2262_v43, 16  ;;  %v3152_v10 = vor.u32 %v3151_v32, %v3148_v35 }
 0x318   : > { %v3057_v36 = vpop.permute.xlu0 %3056  ;;  %v3133_v40 = vrot.slane %v3131_v49, 1  ;;  %v3017_v26 = vpop.permute.xlu1 %3016  ;;  %v3192_v14 = vsel %vm3185_vm7, %v5301_v44, %v3127_v22  ;;  %v3197_v44 = vsel %vm5408_vm11, %v5366_v2, %v3130_v63  ;;  %v3210_v5 = vsel %vm3209_vm1, %v3202_v50, %v3152_v10 }
 0x319   : > { %v3087_v11 = vsel %vm843_vm15, %v5340_v57, %v3057_v36  ;;  %v3070_v57 = vsel %vm840_vm14, %v5319_v16, %v3017_v26  ;;  %vm3220_vm14 = vcmask 220160  }
 0x31a   : > { %v3139_v18 = vor.u32 %v3137_v58, %v3133_v40  ;;  %v3198_v48 = vsel %vm5408_vm11, %v3192_v14, %v3133_v40  ;;  %v3165_v54 = vrot.slane %v3087_v11, 4 }
 0x31b   : > { %3231 = vmatprep.subr.bf16.mxu0 %v3198_v48 }
 0x31c   : > { %v3206_v17 = vsel %vm3199_vm10, %v3139_v18, %v3145_v55  ;;  %v3022_v33 = vpop.permute.xlu1 %3021  ;;  %3232 = vmatpush1.bf16.msra.mxu0 %v3197_v44 }
 0x31d   : > { %v3072_v2 = vsel %vm843_vm15, %v3070_v57, %v3022_v33  ;;  %v3211_v6 = vsel %vm3209_vm1, %v3206_v17, %v3159_v0 }
 0x31e   : > { %v3164_v38 = vrot.slane %v3072_v2, 4  ;;  %v3218_v15 = vsel %vm3212_vm13, %v3211_v6, %v3165_v54 }
 0x31f   : > { %v3229_v53 = vand.u32 %v3226_v56, %v3218_v15 }
 0x320   : > { %v3215_v16 = vsel %vm3212_vm13, %v3210_v5, %v3164_v38 }
 0x321   : > { %3233 = vmatprep.subr.bf16.mxu0 %v3229_v53  ;;  %v3227_v20 = vand.u32 %v3226_v56, %v3215_v16 }
 0x323   : > { %3234 = vmatpush1.bf16.msra.mxu0 %v3227_v20 }
 0x326   : > { %3592 = vmatmul.mubr.msk.bf16.vlgmr.msra.gmra.mrb[0].mxu0 %vm3220_vm14, %v3219_v24 }
 0x3f9   : > { %v3265_v3 = vpop.f32.mrb[0].mxu0 }
 0x3fa   : > { %v3284_v9 = vmul.f32 %v3265_v3, %v3265_v3  ;;  %v3267_v31 = vpop.f32.mrb[1].mxu0 }
 0x3fb   : > { %v3674_v1 = vpack.c.bf16 %v3267_v31, %v3265_v3  ;;  %v3281_v30 = vadd.f32 %v3267_v31, %v3265_v3  ;;  %v3285_v47 = vmul.f32 %v3267_v31, %v3267_v31  ;;  %v3269_v45 = vpop.f32.mrb[2].mxu0 }
 0x3fc   : > { %v3270_v61 = vpop.f32.mrb[3].mxu0 }
 0x3fd   : > { %3282 = vadd.xlane.f32.xlu0 %v3281_v30  ;;  %v3286_v42 = vadd.f32 %v3285_v47, %v3284_v9  ;;  %3280 = vst [vmem:[%s203_s24] sm:$0xff] %v3674_v1 }
 0x3ff   : > { %3287 = vadd.xlane.f32.xlu1 %v3286_v42 }
 0x400   : > { %3823 = shalt.err (!%p3820_p10)
}
 0x401   : > { %s3824_s4 = scalar_lea.hbm %s5434_s5, 128  ;;  %s3828_s9 = scalar_lea.hbm %s5508_s2, 256 }
 0x402   : > { %p3825_p1 = scmp.ne.s32.totalorder %s5434_s5, %s3824_s4  ;;  %p3829_p3 = scmp.lt.u32.totalorder %s5434_s5, %s5508_s2 }
 0x403   : > { %p3830_p4 = scmp.lt.u32.totalorder %s3828_s9, %s3824_s4  ;;  %p3832_p6 = scmp.lt.u32.totalorder %s3824_s4, %s5434_s5 }
 0x404   : > { %p3826_p2 = pnand %p3825_p1, %p4044_p8 }
 0x405   : > { %p3831_p11 = por %p3830_p4, %p3829_p3 }
 0x406   : > { %p3827_p7 = pneg %p3826_p2 }
 0x407   : > { %p3833_p9 = por %p3832_p6, %p3831_p11 }
 0x409   : > { %p3834_p12 = pnand %p3833_p9, %p3827_p7 }
 0x40b   : > { %3837 = shalt.err (!%p3834_p12)
}
 0x40c   : > { %3682 = dma.vmem_to_hbm [thread:$0]  (%p4044_p8), %s3327_s6, 128, %s5434_s5, %s3307_s20   ;;  %v5604_v13 = vlaneseq  ;;  %v5605_v59 = vld [vmem:[#allocation15_spill] sm:$0xff]  ;;  %vm3304_vm0 = vcmask 58368  }
 0x40d   : > { %s3462_s24 = sshll.u32 %s4093_s29, 1  ;;  %s3598_s25 = sshll.u32 %s3973_s16, 5 }
 0x40e   : > { %v3291_v19 = vand.u32 127, %v5604_v13  ;;  %s210_s28 = scalar_lea.vmem [#allocation9], %s3462_s24  ;;  %s5461_s27 = scalar_lea.hbm %s5509_s3, %s3598_s25 }
 0x40f   : > { %s3339_s26 = sshll.u32 %s210_s28, 4  ;;  %s3312_s16 = scalar_lea.sflag [#allocation10], %s4093_s29  ;;  %s5463_s26 = int_to_ptr.vmem [resolvable:$true] %s3339_s26 }
 0x410   : > { %v3294_v28 = vsub.s32 %v3291_v19, %v5605_v59  ;;  %s3838_s5 = scalar_lea.vmem %s5463_s26, 32  ;;  %s3931_s6 = smov [#allocation9]  }
 0x411   : > { %p3839_p13 = scmp.ne.s32.totalorder %s5463_s26, %s3838_s5  ;;  %s3842_s20 = sshll.u32 %s3931_s6, 4  ;;  %s3843_s20 = int_to_ptr.vmem [resolvable:$false] %s3842_s20 }
 0x412   : > { %s3844_s30 = scalar_lea.vmem %s3843_s20, 64  ;;  %p3845_p10 = scmp.lt.s32.totalorder %s5463_s26, %s3843_s20 }
 0x413   : > { %p3840_p0 = pnand %p3839_p13, %p4044_p8  ;;  %p3846_p1 = scmp.lt.s32.totalorder %s3844_s30, %s3838_s5 }
 0x415   : > { %p3841_p5 = pneg %p3840_p0  ;;  %p3847_p2 = por %p3846_p1, %p3845_p10 }
 0x417   : > { %p3848_p7 = pnand %p3847_p2, %p3841_p5 }
 0x48a   : > { %v3283_v41 = vpop.xlane.xlu0 %3282 }
 0x48b   : > { %v3295_v12 = vrot.slane %v3283_v41, %v3294_v28 }
 0x48c   : > { %v3288_v39 = vpop.xlane.xlu1 %3287 }
 0x48d   : > { %v3301_v29 = vrot.slane %v3288_v39, %v3294_v28 }
 0x48f   : > { %v3303_v8 = vsel %vm3199_vm10, %v3295_v12, %v3301_v29 }
 0x490   : > { %3305 = vst.msk [vmem:[%s210_s28] sm:$0x3] %vm3304_vm0, %v3303_v8 }
 0x491   : > { %3851 = shalt.err (!%p3848_p7)
}
 0x492   : > { %s3852_s29 = scalar_lea.hbm %s5461_s27, 32  ;;  %s3856_s8 = scalar_lea.hbm %s5509_s3, 64 }
 0x493   : > { %p3853_p3 = scmp.ne.s32.totalorder %s5461_s27, %s3852_s29  ;;  %p3857_p6 = scmp.lt.u32.totalorder %s5461_s27, %s5509_s3 }
 0x494   : > { %p3858_p9 = scmp.lt.u32.totalorder %s3856_s8, %s3852_s29  ;;  %p3860_p13 = scmp.lt.u32.totalorder %s3852_s29, %s5461_s27 }
 0x495   : > { %p3854_p4 = pnand %p3853_p3, %p4044_p8 }
 0x496   : > { %p3859_p12 = por %p3858_p9, %p3857_p6 }
 0x497   : > { %p3855_p11 = pneg %p3854_p4 }
 0x498   : > { %p3861_p0 = por %p3860_p13, %p3859_p12 }
 0x49a   : > { %p3862_p5 = pnand %p3861_p0, %p3855_p11 }
 0x49c   : > { %3865 = shalt.err (!%p3862_p5)
}
 0x49d   : > { %3683 = dma.vmem_to_hbm [thread:$0]  (%p4044_p8), %s5463_s26, 32, %s5461_s27, %s3312_s16  }
 0x49e PF: > { %s3351_s21 = sand.u32 1, %s3900_s12   ;;  %p5606_p10 = scmp.ne.s32.totalorder %s5524_s19, 0 }
 0x49f   : > { %p5607_p1 = scmp.ge.s32.totalorder %s3912_s15, 2  ;;  %s3352_s24 = scalar_lea.sflag [#allocation5], %s3351_s21 }
 0x4a1   : > { %p3695_p2 = pnand %p5607_p1, %p5606_p10 }
 0x4a3   : > { %3891 = dma.done.wait (!%p3695_p2), %s3352_s24, 128  }
 0x4a4   : > { %3893 = vsyncadd (!%p3695_p2), %s3352_s24, 4294967168  ;;  %s3361_s25 = scalar_lea.sflag [#allocation10], %s3351_s21 }
 0x4a5   : > { %3895 = dma.done.wait (!%p3695_p2), %s3361_s25, 32  }
 0x4a6   : > { %3897 = vsyncadd (!%p3695_p2), %s3361_s25, 4294967264  ;;  %p21_p8 = scmp.ge.s32.totalorder %s4000_s23, 4   ;;  %s5608_s12 = smov %s3904_s13 }
 0x4a7   : > { %s5609_s13 = smov %s3908_s14  ;;  %s5610_s14 = smov %s4036_s11 }
 0x4a8   : > { %s5611_s15 = smov %s4000_s23  ;;  %23 = sbr.rel (!%p21_p8) target bundleno = 8 (0x8), region = 94 }
 0x4af   :  { %3366 = vsyncpa [#allocation4], 1 }
 0x4b0   :  { %3368 = vsyncpa [#allocation4 + $0x1], 1 }
 0x4b1   :  { %3369 = vsyncpa [#allocation7], 1 }
 0x4b2   :  { %3370 = vsyncpa [#allocation5], 1 }
 0x4b3   :  { %3372 = vsyncpa [#allocation5 + $0x1], 1 }
 0x4b4   :  { %3373 = vsyncpa [#allocation10], 1 }
 0x4b5   :  { %3375 = vsyncpa [#allocation10 + $0x1], 1 }

</bundles_post_ra>
